<compile_context>
chip_gen: v7x
topology: tpu7x:2x2x1
jax: 0.10.0
libtpu: 0.0.40
codegen_flags: <defaults>
</compile_context>

<pallas_src>
import functools

import jax
import jax.numpy as jnp
from jax.experimental import pallas as pl
from jax.experimental.pallas import tpu as pltpu


def attention_kernel(x_ref, wq_ref, wk_ref, wv_ref, wp_ref, b_ref, o_ref, *, num_heads):
    """One grid step = `block_b` whole batch elements (x/o blocks: (block_b, N, C))."""
    bb, n, c = x_ref.shape
    d = c // num_heads
    cdt = x_ref.dtype          # MXU operand dtype (bf16 fast path / f32 exact); acc always f32

    # Hoist grid-invariant weight loads out of the batch loop (JAX does not CSE them).
    wq = wq_ref[...]           # (C, C), (in, out) layout, scale already folded in
    wk = wk_ref[...]
    wv = wv_ref[...]
    wp = wp_ref[...]
    bias = b_ref[...]          # (1, C), f32

    for b in range(bb):        # static, small (block_b)
        x_b = x_ref[b]         # (N, C)

        # Lane-dense 2-D projections: (N, C) @ (C, C). C-deep contraction, C-wide MXU output.
        q = jnp.dot(x_b, wq, preferred_element_type=jnp.float32).astype(cdt)
        k = jnp.dot(x_b, wk, preferred_element_type=jnp.float32).astype(cdt)
        v = jnp.dot(x_b, wv, preferred_element_type=jnp.float32).astype(cdt)

        # Per-head attention (inherently per-head matmuls). Scores/softmax stay f32
        # (v5e has no bf16 VPU/EUP); head slices are lane-aligned at production head_dim.
        ctx_heads = []
        for h in range(num_heads):
            sl = slice(h * d, (h + 1) * d)
            qh, kh, vh = q[:, sl], k[:, sl], v[:, sl]          # (N, d) each
            s = jnp.einsum("nd,md->nm", qh, kh, preferred_element_type=jnp.float32)
            s = s - jnp.max(s, axis=-1, keepdims=True)
            p = jnp.exp(s)
            denom = jnp.sum(p, axis=-1, keepdims=True)
            # approx reciprocal -> EUP slot (otherwise idle); ~1e-4 relative error.
            p = (p * pl.reciprocal(denom, approx=True)).astype(cdt)
            # attn_drop = Dropout(p=0.0) -> identity.
            ctx_heads.append(jnp.dot(p, vh, preferred_element_type=jnp.float32).astype(cdt))

        # Assemble ctx lane-dense, then ONE (N, C) @ (C, C) output projection
        # (head-concat folded into the operand instead of a sum of d-deep per-head matmuls).
        ctx = jnp.concatenate(ctx_heads, axis=-1)              # (N, C)
        out_b = jnp.dot(ctx, wp, preferred_element_type=jnp.float32) + bias
        # proj_drop = Dropout(p=0.0) -> identity.
        o_ref[b] = out_b.astype(o_ref.dtype)


def _pick_block_b(batch, seq, target_rows, min_grid_steps=2):
    """Largest divisor of `batch` that keeps <= ~target_rows rows per step AND leaves at least
    `min_grid_steps` parallel grid steps (so v7x's second TensorCore gets work)."""
    cap = max(1, min(batch, target_rows // max(seq, 1)))
    if batch >= min_grid_steps:
        cap = min(cap, batch // min_grid_steps)
    bb = max(1, cap)
    while batch % bb != 0:
        bb -= 1
    return bb


def _vmem_limit_bytes():
    """Per-generation VMEM budget: 64 MiB on 128-MiB parts (v5e/v6e), ~48 MiB on v7x (64 MiB)."""
    cap = 128 * 1024 * 1024
    try:
        cap = int(getattr(pltpu.get_tpu_info(), "vmem_capacity_bytes", cap))
    except Exception:
        pass
    return int(min(64 * 1024 * 1024, (cap * 3) // 4))


@functools.partial(jax.jit, static_argnames=("num_heads", "qk_scale", "compute_dtype",
                                             "block_rows", "single_buffer_weights"))
def _attention_impl(x, w_qkv, w_proj, b_proj, *, num_heads, qk_scale, compute_dtype,
                    block_rows, single_buffer_weights):
    B, N, C = x.shape
    d = C // num_heads
    scale = qk_scale if qk_scale is not None else d ** (-0.5)

    # Host-side weight prep (free layout plumbing): split fused qkv, fold scale into Wq,
    # transpose every projection to (in, out) so the kernel does plain x @ W matmuls.
    wq = (w_qkv[0 * C:1 * C] * scale).T.astype(compute_dtype)   # (C, C)
    wk = w_qkv[1 * C:2 * C].T.astype(compute_dtype)
    wv = w_qkv[2 * C:3 * C].T.astype(compute_dtype)
    wp = w_proj.T.astype(compute_dtype)
    bp = b_proj.reshape(1, C).astype(jnp.float32)
    xk = x.astype(compute_dtype)

    block_b = _pick_block_b(B, N, block_rows)        # B=2, N=8 -> block_b=1 -> 2 parallel steps
    grid = (B // block_b,)

    def const_spec(shape):
        # Grid-invariant blocks: single-buffer them (double-buffering only doubles VMEM use).
        if single_buffer_weights:
            return pl.BlockSpec(shape, lambda i: (0,) * len(shape),
                                pipeline_mode=pl.Buffered(1))
        return pl.BlockSpec(shape, lambda i: (0,) * len(shape))

    kernel = functools.partial(attention_kernel, num_heads=num_heads)
    return pl.pallas_call(
        kernel,
        out_shape=jax.ShapeDtypeStruct((B, N, C), x.dtype),
        grid_spec=pltpu.PrefetchScalarGridSpec(
            num_scalar_prefetch=0,
            grid=grid,
            in_specs=[
                pl.BlockSpec((block_b, N, C), lambda i: (i, 0, 0)),   # x: block of batch rows
                const_spec((C, C)),                                   # Wq (scale folded in)
                const_spec((C, C)),                                   # Wk
                const_spec((C, C)),                                   # Wv
                const_spec((C, C)),                                   # Wproj
                const_spec((1, C)),                                   # proj bias
            ],
            out_specs=pl.BlockSpec((block_b, N, C), lambda i: (i, 0, 0)),
        ),
        compiler_params=pltpu.CompilerParams(
            dimension_semantics=("parallel",),
            vmem_limit_bytes=_vmem_limit_bytes(),
        ),
    )(xk, wq, wk, wv, wp, bp)


def attention_forward(x, w_qkv, w_proj, b_proj, *, num_heads, qk_scale=None,
                      compute_dtype=jnp.bfloat16, block_rows=512):
    """x: (B, N, C). Weights in PyTorch nn.Linear layout: w_qkv (3C, C), w_proj (C, C), b_proj (C,)."""
    kwargs = dict(num_heads=num_heads, qk_scale=qk_scale, compute_dtype=compute_dtype,
                  block_rows=block_rows)
    try:
        return _attention_impl(x, w_qkv, w_proj, b_proj, single_buffer_weights=True, **kwargs)
    except Exception:
        # Fallback for JAX versions that reject pipeline_mode=pl.Buffered(1): double-buffer the
        # (tiny) grid-invariant weight blocks instead. Numerics are identical.
        return _attention_impl(x, w_qkv, w_proj, b_proj, single_buffer_weights=False, **kwargs)


def attention_reference(x, w_qkv, w_proj, b_proj, *, num_heads, scale):
    """Pure-JAX transcription of the PyTorch forward (PyTorch weight layout)."""
    B, N, C = x.shape
    d = C // num_heads
    qkv = x @ w_qkv.T                                                # (B, N, 3C)
    qkv = qkv.reshape(B, N, 3, num_heads, d).transpose(2, 0, 3, 1, 4)
    q, k, v = qkv[0], qkv[1], qkv[2]                                 # (B, H, N, d)
    attn = jax.nn.softmax((q @ jnp.swapaxes(k, -2, -1)) * scale, axis=-1)
    out = (attn @ v).transpose(0, 2, 1, 3).reshape(B, N, C)
    return out @ w_proj.T + b_proj


if __name__ == "__main__":
    # Small shapes consistent with the module: B=2, N=8 (seq), C=32 (dim), 8 heads (head_dim=4).
    B, N, C = 2, 8, 32
    num_heads = 8
    head_dim = C // num_heads
    scale = head_dim ** (-0.5)

    key = jax.random.PRNGKey(0)
    kx, kqkv, kw, kb = jax.random.split(key, 4)

    x = jax.random.normal(kx, (B, N, C), dtype=jnp.float32)

    # PyTorch-Linear-layout parameters (out_features, in_features); qkv_bias=False -> no qkv bias.
    bound = 1.0 / (C ** 0.5)
    w_qkv = jax.random.uniform(kqkv, (3 * C, C), jnp.float32, -bound, bound)
    w_proj = jax.random.uniform(kw, (C, C), jnp.float32, -bound, bound)
    b_proj = jax.random.uniform(kb, (C,), jnp.float32, -bound, bound)

    ref = attention_reference(x, w_qkv, w_proj, b_proj, num_heads=num_heads, scale=scale)

    # f32 path: exact module numerics up to folded scale + approx softmax reciprocal (~1e-4 rel).
    out_f32 = jax.block_until_ready(
        attention_forward(x, w_qkv, w_proj, b_proj, num_heads=num_heads,
                          compute_dtype=jnp.float32))
    assert out_f32.shape == (B, N, C)
    assert jnp.allclose(out_f32, ref, atol=1e-3, rtol=1e-3), "f32 Pallas output mismatch vs reference"

    # bf16-operand / f32-accumulate path: the fast MXU path on v6e/v7x (and the default).
    out_bf16 = jax.block_until_ready(
        attention_forward(x, w_qkv, w_proj, b_proj, num_heads=num_heads,
                          compute_dtype=jnp.bfloat16))
    assert out_bf16.shape == (B, N, C)
    assert jnp.allclose(out_bf16, ref, atol=5e-2, rtol=5e-2), "bf16 Pallas output mismatch vs reference"

    print("KERNEL_OK")
</pallas_src>

<mosaic_0001>
module attributes {stable_mosaic.version = 11 : i64} {
  func.func @attention_kernel(%arg0: i32, %arg1: memref<1x8x32xf32, #tpu.memory_space<vmem>>, %arg2: memref<32x32xf32, #tpu.memory_space<vmem>>, %arg3: memref<32x32xf32, #tpu.memory_space<vmem>>, %arg4: memref<32x32xf32, #tpu.memory_space<vmem>>, %arg5: memref<32x32xf32, #tpu.memory_space<vmem>>, %arg6: memref<1x32xf32, #tpu.memory_space<vmem>>, %arg7: memref<1x8x32xf32, #tpu.memory_space<vmem>>) attributes {dimension_semantics = [#tpu.dimension_semantics<parallel>], iteration_bounds = array<i64: 2>, scalar_prefetch = 0 : i64, scratch_operands = 0 : i64, tpu.core_type = #tpu.core_type<tc>, window_params = [{transform_indices = @transform_0, window_bounds = array<i64: 1, 8, 32>}, {pipeline_mode = #tpu.pipeline_mode<synchronous>, transform_indices = @transform_1, window_bounds = array<i64: 32, 32>}, {pipeline_mode = #tpu.pipeline_mode<synchronous>, transform_indices = @transform_2, window_bounds = array<i64: 32, 32>}, {pipeline_mode = #tpu.pipeline_mode<synchronous>, transform_indices = @transform_3, window_bounds = array<i64: 32, 32>}, {pipeline_mode = #tpu.pipeline_mode<synchronous>, transform_indices = @transform_4, window_bounds = array<i64: 32, 32>}, {pipeline_mode = #tpu.pipeline_mode<synchronous>, transform_indices = @transform_5, window_bounds = array<i64: 1, 32>}, {transform_indices = @transform_6, window_bounds = array<i64: 1, 8, 32>}]} {
    %c0 = arith.constant 0 : index
    %c0_0 = arith.constant 0 : index
    %0 = vector.load %arg2[%c0, %c0_0] : memref<32x32xf32, #tpu.memory_space<vmem>>, vector<32x32xf32>
    %c0_1 = arith.constant 0 : index
    %c0_2 = arith.constant 0 : index
    %1 = vector.load %arg3[%c0_1, %c0_2] : memref<32x32xf32, #tpu.memory_space<vmem>>, vector<32x32xf32>
    %c0_3 = arith.constant 0 : index
    %c0_4 = arith.constant 0 : index
    %2 = vector.load %arg4[%c0_3, %c0_4] : memref<32x32xf32, #tpu.memory_space<vmem>>, vector<32x32xf32>
    %c0_5 = arith.constant 0 : index
    %c0_6 = arith.constant 0 : index
    %3 = vector.load %arg5[%c0_5, %c0_6] : memref<32x32xf32, #tpu.memory_space<vmem>>, vector<32x32xf32>
    %c0_7 = arith.constant 0 : index
    %c0_8 = arith.constant 0 : index
    %4 = vector.load %arg6[%c0_7, %c0_8] : memref<1x32xf32, #tpu.memory_space<vmem>>, vector<1x32xf32>
    %c0_9 = arith.constant 0 : index
    %c0_10 = arith.constant 0 : index
    %c0_11 = arith.constant 0 : index
    %5 = vector.load %arg1[%c0_9, %c0_10, %c0_11] : memref<1x8x32xf32, #tpu.memory_space<vmem>>, vector<1x8x32xf32>
    %6 = vector.shape_cast %5 : vector<1x8x32xf32> to vector<8x32xf32>
    %cst = arith.constant dense<0.000000e+00> : vector<8x32xf32>
    %7 = tpu.matmul %6, %0, %cst {dimension_numbers = #tpu.dot_dimension_numbers<[1], [0], [0], [1], [0, 0, 1, 1], [], []>} : vector<8x32xf32>, vector<32x32xf32>, vector<8x32xf32> -> vector<8x32xf32>
    %cst_12 = arith.constant dense<0.000000e+00> : vector<8x32xf32>
    %8 = tpu.matmul %6, %1, %cst_12 {dimension_numbers = #tpu.dot_dimension_numbers<[1], [0], [0], [1], [0, 0, 1, 1], [], []>} : vector<8x32xf32>, vector<32x32xf32>, vector<8x32xf32> -> vector<8x32xf32>
    %cst_13 = arith.constant dense<0.000000e+00> : vector<8x32xf32>
    %9 = tpu.matmul %6, %2, %cst_13 {dimension_numbers = #tpu.dot_dimension_numbers<[1], [0], [0], [1], [0, 0, 1, 1], [], []>} : vector<8x32xf32>, vector<32x32xf32>, vector<8x32xf32> -> vector<8x32xf32>
    %10 = vector.extract_strided_slice %7 {offsets = [0, 0], sizes = [8, 4], strides = [1, 1]} : vector<8x32xf32> to vector<8x4xf32>
    %11 = vector.extract_strided_slice %8 {offsets = [0, 0], sizes = [8, 4], strides = [1, 1]} : vector<8x32xf32> to vector<8x4xf32>
    %12 = vector.extract_strided_slice %9 {offsets = [0, 0], sizes = [8, 4], strides = [1, 1]} : vector<8x32xf32> to vector<8x4xf32>
    "tpu.trace_start"() <{level = 10 : i32, message = "nd,md->nm"}> : () -> ()
    %cst_14 = arith.constant dense<0.000000e+00> : vector<8x8xf32>
    %13 = tpu.matmul %10, %11, %cst_14 {dimension_numbers = #tpu.dot_dimension_numbers<[1], [1], [0], [0], [0, 0, 1, 0], [], []>} : vector<8x4xf32>, vector<8x4xf32>, vector<8x8xf32> -> vector<8x8xf32>
    "tpu.trace_stop"() : () -> ()
    %cst_15 = arith.constant dense<0xFF800000> : vector<8xf32>
    %14 = vector.multi_reduction <maximumf>, %13, %cst_15 [1] : vector<8x8xf32> to vector<8xf32>
    %15 = vector.shape_cast %14 : vector<8xf32> to vector<8x1xf32>
    %16 = vector.broadcast %15 : vector<8x1xf32> to vector<8x8xf32>
    %17 = arith.subf %13, %16 : vector<8x8xf32>
    %18 = math.exp %17 : vector<8x8xf32>
    %cst_16 = arith.constant dense<0.000000e+00> : vector<8xf32>
    %19 = vector.multi_reduction <add>, %18, %cst_16 [1] : vector<8x8xf32> to vector<8xf32>
    %20 = vector.shape_cast %19 : vector<8xf32> to vector<8x1xf32>
    %21 = tpu.reciprocal %20 {approx = true} : vector<8x1xf32> -> vector<8x1xf32>
    %22 = vector.broadcast %21 : vector<8x1xf32> to vector<8x8xf32>
    %23 = arith.mulf %18, %22 : vector<8x8xf32>
    %cst_17 = arith.constant dense<0.000000e+00> : vector<8x4xf32>
    %24 = tpu.matmul %23, %12, %cst_17 {dimension_numbers = #tpu.dot_dimension_numbers<[1], [0], [0], [1], [0, 0, 1, 1], [], []>} : vector<8x8xf32>, vector<8x4xf32>, vector<8x4xf32> -> vector<8x4xf32>
    %25 = vector.extract_strided_slice %7 {offsets = [0, 4], sizes = [8, 4], strides = [1, 1]} : vector<8x32xf32> to vector<8x4xf32>
    %26 = vector.extract_strided_slice %8 {offsets = [0, 4], sizes = [8, 4], strides = [1, 1]} : vector<8x32xf32> to vector<8x4xf32>
    %27 = vector.extract_strided_slice %9 {offsets = [0, 4], sizes = [8, 4], strides = [1, 1]} : vector<8x32xf32> to vector<8x4xf32>
    "tpu.trace_start"() <{level = 10 : i32, message = "nd,md->nm"}> : () -> ()
    %cst_18 = arith.constant dense<0.000000e+00> : vector<8x8xf32>
    %28 = tpu.matmul %25, %26, %cst_18 {dimension_numbers = #tpu.dot_dimension_numbers<[1], [1], [0], [0], [0, 0, 1, 0], [], []>} : vector<8x4xf32>, vector<8x4xf32>, vector<8x8xf32> -> vector<8x8xf32>
    "tpu.trace_stop"() : () -> ()
    %cst_19 = arith.constant dense<0xFF800000> : vector<8xf32>
    %29 = vector.multi_reduction <maximumf>, %28, %cst_19 [1] : vector<8x8xf32> to vector<8xf32>
    %30 = vector.shape_cast %29 : vector<8xf32> to vector<8x1xf32>
    %31 = vector.broadcast %30 : vector<8x1xf32> to vector<8x8xf32>
    %32 = arith.subf %28, %31 : vector<8x8xf32>
    %33 = math.exp %32 : vector<8x8xf32>
    %cst_20 = arith.constant dense<0.000000e+00> : vector<8xf32>
    %34 = vector.multi_reduction <add>, %33, %cst_20 [1] : vector<8x8xf32> to vector<8xf32>
    %35 = vector.shape_cast %34 : vector<8xf32> to vector<8x1xf32>
    %36 = tpu.reciprocal %35 {approx = true} : vector<8x1xf32> -> vector<8x1xf32>
    %37 = vector.broadcast %36 : vector<8x1xf32> to vector<8x8xf32>
    %38 = arith.mulf %33, %37 : vector<8x8xf32>
    %cst_21 = arith.constant dense<0.000000e+00> : vector<8x4xf32>
    %39 = tpu.matmul %38, %27, %cst_21 {dimension_numbers = #tpu.dot_dimension_numbers<[1], [0], [0], [1], [0, 0, 1, 1], [], []>} : vector<8x8xf32>, vector<8x4xf32>, vector<8x4xf32> -> vector<8x4xf32>
    %40 = vector.extract_strided_slice %7 {offsets = [0, 8], sizes = [8, 4], strides = [1, 1]} : vector<8x32xf32> to vector<8x4xf32>
    %41 = vector.extract_strided_slice %8 {offsets = [0, 8], sizes = [8, 4], strides = [1, 1]} : vector<8x32xf32> to vector<8x4xf32>
    %42 = vector.extract_strided_slice %9 {offsets = [0, 8], sizes = [8, 4], strides = [1, 1]} : vector<8x32xf32> to vector<8x4xf32>
    "tpu.trace_start"() <{level = 10 : i32, message = "nd,md->nm"}> : () -> ()
    %cst_22 = arith.constant dense<0.000000e+00> : vector<8x8xf32>
    %43 = tpu.matmul %40, %41, %cst_22 {dimension_numbers = #tpu.dot_dimension_numbers<[1], [1], [0], [0], [0, 0, 1, 0], [], []>} : vector<8x4xf32>, vector<8x4xf32>, vector<8x8xf32> -> vector<8x8xf32>
    "tpu.trace_stop"() : () -> ()
    %cst_23 = arith.constant dense<0xFF800000> : vector<8xf32>
    %44 = vector.multi_reduction <maximumf>, %43, %cst_23 [1] : vector<8x8xf32> to vector<8xf32>
    %45 = vector.shape_cast %44 : vector<8xf32> to vector<8x1xf32>
    %46 = vector.broadcast %45 : vector<8x1xf32> to vector<8x8xf32>
    %47 = arith.subf %43, %46 : vector<8x8xf32>
    %48 = math.exp %47 : vector<8x8xf32>
    %cst_24 = arith.constant dense<0.000000e+00> : vector<8xf32>
    %49 = vector.multi_reduction <add>, %48, %cst_24 [1] : vector<8x8xf32> to vector<8xf32>
    %50 = vector.shape_cast %49 : vector<8xf32> to vector<8x1xf32>
    %51 = tpu.reciprocal %50 {approx = true} : vector<8x1xf32> -> vector<8x1xf32>
    %52 = vector.broadcast %51 : vector<8x1xf32> to vector<8x8xf32>
    %53 = arith.mulf %48, %52 : vector<8x8xf32>
    %cst_25 = arith.constant dense<0.000000e+00> : vector<8x4xf32>
    %54 = tpu.matmul %53, %42, %cst_25 {dimension_numbers = #tpu.dot_dimension_numbers<[1], [0], [0], [1], [0, 0, 1, 1], [], []>} : vector<8x8xf32>, vector<8x4xf32>, vector<8x4xf32> -> vector<8x4xf32>
    %55 = vector.extract_strided_slice %7 {offsets = [0, 12], sizes = [8, 4], strides = [1, 1]} : vector<8x32xf32> to vector<8x4xf32>
    %56 = vector.extract_strided_slice %8 {offsets = [0, 12], sizes = [8, 4], strides = [1, 1]} : vector<8x32xf32> to vector<8x4xf32>
    %57 = vector.extract_strided_slice %9 {offsets = [0, 12], sizes = [8, 4], strides = [1, 1]} : vector<8x32xf32> to vector<8x4xf32>
    "tpu.trace_start"() <{level = 10 : i32, message = "nd,md->nm"}> : () -> ()
    %cst_26 = arith.constant dense<0.000000e+00> : vector<8x8xf32>
    %58 = tpu.matmul %55, %56, %cst_26 {dimension_numbers = #tpu.dot_dimension_numbers<[1], [1], [0], [0], [0, 0, 1, 0], [], []>} : vector<8x4xf32>, vector<8x4xf32>, vector<8x8xf32> -> vector<8x8xf32>
    "tpu.trace_stop"() : () -> ()
    %cst_27 = arith.constant dense<0xFF800000> : vector<8xf32>
    %59 = vector.multi_reduction <maximumf>, %58, %cst_27 [1] : vector<8x8xf32> to vector<8xf32>
    %60 = vector.shape_cast %59 : vector<8xf32> to vector<8x1xf32>
    %61 = vector.broadcast %60 : vector<8x1xf32> to vector<8x8xf32>
    %62 = arith.subf %58, %61 : vector<8x8xf32>
    %63 = math.exp %62 : vector<8x8xf32>
    %cst_28 = arith.constant dense<0.000000e+00> : vector<8xf32>
    %64 = vector.multi_reduction <add>, %63, %cst_28 [1] : vector<8x8xf32> to vector<8xf32>
    %65 = vector.shape_cast %64 : vector<8xf32> to vector<8x1xf32>
    %66 = tpu.reciprocal %65 {approx = true} : vector<8x1xf32> -> vector<8x1xf32>
    %67 = vector.broadcast %66 : vector<8x1xf32> to vector<8x8xf32>
    %68 = arith.mulf %63, %67 : vector<8x8xf32>
    %cst_29 = arith.constant dense<0.000000e+00> : vector<8x4xf32>
    %69 = tpu.matmul %68, %57, %cst_29 {dimension_numbers = #tpu.dot_dimension_numbers<[1], [0], [0], [1], [0, 0, 1, 1], [], []>} : vector<8x8xf32>, vector<8x4xf32>, vector<8x4xf32> -> vector<8x4xf32>
    %70 = vector.extract_strided_slice %7 {offsets = [0, 16], sizes = [8, 4], strides = [1, 1]} : vector<8x32xf32> to vector<8x4xf32>
    %71 = vector.extract_strided_slice %8 {offsets = [0, 16], sizes = [8, 4], strides = [1, 1]} : vector<8x32xf32> to vector<8x4xf32>
    %72 = vector.extract_strided_slice %9 {offsets = [0, 16], sizes = [8, 4], strides = [1, 1]} : vector<8x32xf32> to vector<8x4xf32>
    "tpu.trace_start"() <{level = 10 : i32, message = "nd,md->nm"}> : () -> ()
    %cst_30 = arith.constant dense<0.000000e+00> : vector<8x8xf32>
    %73 = tpu.matmul %70, %71, %cst_30 {dimension_numbers = #tpu.dot_dimension_numbers<[1], [1], [0], [0], [0, 0, 1, 0], [], []>} : vector<8x4xf32>, vector<8x4xf32>, vector<8x8xf32> -> vector<8x8xf32>
    "tpu.trace_stop"() : () -> ()
    %cst_31 = arith.constant dense<0xFF800000> : vector<8xf32>
    %74 = vector.multi_reduction <maximumf>, %73, %cst_31 [1] : vector<8x8xf32> to vector<8xf32>
    %75 = vector.shape_cast %74 : vector<8xf32> to vector<8x1xf32>
    %76 = vector.broadcast %75 : vector<8x1xf32> to vector<8x8xf32>
    %77 = arith.subf %73, %76 : vector<8x8xf32>
    %78 = math.exp %77 : vector<8x8xf32>
    %cst_32 = arith.constant dense<0.000000e+00> : vector<8xf32>
    %79 = vector.multi_reduction <add>, %78, %cst_32 [1] : vector<8x8xf32> to vector<8xf32>
    %80 = vector.shape_cast %79 : vector<8xf32> to vector<8x1xf32>
    %81 = tpu.reciprocal %80 {approx = true} : vector<8x1xf32> -> vector<8x1xf32>
    %82 = vector.broadcast %81 : vector<8x1xf32> to vector<8x8xf32>
    %83 = arith.mulf %78, %82 : vector<8x8xf32>
    %cst_33 = arith.constant dense<0.000000e+00> : vector<8x4xf32>
    %84 = tpu.matmul %83, %72, %cst_33 {dimension_numbers = #tpu.dot_dimension_numbers<[1], [0], [0], [1], [0, 0, 1, 1], [], []>} : vector<8x8xf32>, vector<8x4xf32>, vector<8x4xf32> -> vector<8x4xf32>
    %85 = vector.extract_strided_slice %7 {offsets = [0, 20], sizes = [8, 4], strides = [1, 1]} : vector<8x32xf32> to vector<8x4xf32>
    %86 = vector.extract_strided_slice %8 {offsets = [0, 20], sizes = [8, 4], strides = [1, 1]} : vector<8x32xf32> to vector<8x4xf32>
    %87 = vector.extract_strided_slice %9 {offsets = [0, 20], sizes = [8, 4], strides = [1, 1]} : vector<8x32xf32> to vector<8x4xf32>
    "tpu.trace_start"() <{level = 10 : i32, message = "nd,md->nm"}> : () -> ()
    %cst_34 = arith.constant dense<0.000000e+00> : vector<8x8xf32>
    %88 = tpu.matmul %85, %86, %cst_34 {dimension_numbers = #tpu.dot_dimension_numbers<[1], [1], [0], [0], [0, 0, 1, 0], [], []>} : vector<8x4xf32>, vector<8x4xf32>, vector<8x8xf32> -> vector<8x8xf32>
    "tpu.trace_stop"() : () -> ()
    %cst_35 = arith.constant dense<0xFF800000> : vector<8xf32>
    %89 = vector.multi_reduction <maximumf>, %88, %cst_35 [1] : vector<8x8xf32> to vector<8xf32>
    %90 = vector.shape_cast %89 : vector<8xf32> to vector<8x1xf32>
    %91 = vector.broadcast %90 : vector<8x1xf32> to vector<8x8xf32>
    %92 = arith.subf %88, %91 : vector<8x8xf32>
    %93 = math.exp %92 : vector<8x8xf32>
    %cst_36 = arith.constant dense<0.000000e+00> : vector<8xf32>
    %94 = vector.multi_reduction <add>, %93, %cst_36 [1] : vector<8x8xf32> to vector<8xf32>
    %95 = vector.shape_cast %94 : vector<8xf32> to vector<8x1xf32>
    %96 = tpu.reciprocal %95 {approx = true} : vector<8x1xf32> -> vector<8x1xf32>
    %97 = vector.broadcast %96 : vector<8x1xf32> to vector<8x8xf32>
    %98 = arith.mulf %93, %97 : vector<8x8xf32>
    %cst_37 = arith.constant dense<0.000000e+00> : vector<8x4xf32>
    %99 = tpu.matmul %98, %87, %cst_37 {dimension_numbers = #tpu.dot_dimension_numbers<[1], [0], [0], [1], [0, 0, 1, 1], [], []>} : vector<8x8xf32>, vector<8x4xf32>, vector<8x4xf32> -> vector<8x4xf32>
    %100 = vector.extract_strided_slice %7 {offsets = [0, 24], sizes = [8, 4], strides = [1, 1]} : vector<8x32xf32> to vector<8x4xf32>
    %101 = vector.extract_strided_slice %8 {offsets = [0, 24], sizes = [8, 4], strides = [1, 1]} : vector<8x32xf32> to vector<8x4xf32>
    %102 = vector.extract_strided_slice %9 {offsets = [0, 24], sizes = [8, 4], strides = [1, 1]} : vector<8x32xf32> to vector<8x4xf32>
    "tpu.trace_start"() <{level = 10 : i32, message = "nd,md->nm"}> : () -> ()
    %cst_38 = arith.constant dense<0.000000e+00> : vector<8x8xf32>
    %103 = tpu.matmul %100, %101, %cst_38 {dimension_numbers = #tpu.dot_dimension_numbers<[1], [1], [0], [0], [0, 0, 1, 0], [], []>} : vector<8x4xf32>, vector<8x4xf32>, vector<8x8xf32> -> vector<8x8xf32>
    "tpu.trace_stop"() : () -> ()
    %cst_39 = arith.constant dense<0xFF800000> : vector<8xf32>
    %104 = vector.multi_reduction <maximumf>, %103, %cst_39 [1] : vector<8x8xf32> to vector<8xf32>
    %105 = vector.shape_cast %104 : vector<8xf32> to vector<8x1xf32>
    %106 = vector.broadcast %105 : vector<8x1xf32> to vector<8x8xf32>
    %107 = arith.subf %103, %106 : vector<8x8xf32>
    %108 = math.exp %107 : vector<8x8xf32>
    %cst_40 = arith.constant dense<0.000000e+00> : vector<8xf32>
    %109 = vector.multi_reduction <add>, %108, %cst_40 [1] : vector<8x8xf32> to vector<8xf32>
    %110 = vector.shape_cast %109 : vector<8xf32> to vector<8x1xf32>
    %111 = tpu.reciprocal %110 {approx = true} : vector<8x1xf32> -> vector<8x1xf32>
    %112 = vector.broadcast %111 : vector<8x1xf32> to vector<8x8xf32>
    %113 = arith.mulf %108, %112 : vector<8x8xf32>
    %cst_41 = arith.constant dense<0.000000e+00> : vector<8x4xf32>
    %114 = tpu.matmul %113, %102, %cst_41 {dimension_numbers = #tpu.dot_dimension_numbers<[1], [0], [0], [1], [0, 0, 1, 1], [], []>} : vector<8x8xf32>, vector<8x4xf32>, vector<8x4xf32> -> vector<8x4xf32>
    %115 = vector.extract_strided_slice %7 {offsets = [0, 28], sizes = [8, 4], strides = [1, 1]} : vector<8x32xf32> to vector<8x4xf32>
    %116 = vector.extract_strided_slice %8 {offsets = [0, 28], sizes = [8, 4], strides = [1, 1]} : vector<8x32xf32> to vector<8x4xf32>
    %117 = vector.extract_strided_slice %9 {offsets = [0, 28], sizes = [8, 4], strides = [1, 1]} : vector<8x32xf32> to vector<8x4xf32>
    "tpu.trace_start"() <{level = 10 : i32, message = "nd,md->nm"}> : () -> ()
    %cst_42 = arith.constant dense<0.000000e+00> : vector<8x8xf32>
    %118 = tpu.matmul %115, %116, %cst_42 {dimension_numbers = #tpu.dot_dimension_numbers<[1], [1], [0], [0], [0, 0, 1, 0], [], []>} : vector<8x4xf32>, vector<8x4xf32>, vector<8x8xf32> -> vector<8x8xf32>
    "tpu.trace_stop"() : () -> ()
    %cst_43 = arith.constant dense<0xFF800000> : vector<8xf32>
    %119 = vector.multi_reduction <maximumf>, %118, %cst_43 [1] : vector<8x8xf32> to vector<8xf32>
    %120 = vector.shape_cast %119 : vector<8xf32> to vector<8x1xf32>
    %121 = vector.broadcast %120 : vector<8x1xf32> to vector<8x8xf32>
    %122 = arith.subf %118, %121 : vector<8x8xf32>
    %123 = math.exp %122 : vector<8x8xf32>
    %cst_44 = arith.constant dense<0.000000e+00> : vector<8xf32>
    %124 = vector.multi_reduction <add>, %123, %cst_44 [1] : vector<8x8xf32> to vector<8xf32>
    %125 = vector.shape_cast %124 : vector<8xf32> to vector<8x1xf32>
    %126 = tpu.reciprocal %125 {approx = true} : vector<8x1xf32> -> vector<8x1xf32>
    %127 = vector.broadcast %126 : vector<8x1xf32> to vector<8x8xf32>
    %128 = arith.mulf %123, %127 : vector<8x8xf32>
    %cst_45 = arith.constant dense<0.000000e+00> : vector<8x4xf32>
    %129 = tpu.matmul %128, %117, %cst_45 {dimension_numbers = #tpu.dot_dimension_numbers<[1], [0], [0], [1], [0, 0, 1, 1], [], []>} : vector<8x8xf32>, vector<8x4xf32>, vector<8x4xf32> -> vector<8x4xf32>
    %130 = tpu.concatenate %24, %39, %54, %69, %84, %99, %114, %129 in 1 : vector<8x4xf32>, vector<8x4xf32>, vector<8x4xf32>, vector<8x4xf32>, vector<8x4xf32>, vector<8x4xf32>, vector<8x4xf32>, vector<8x4xf32> -> vector<8x32xf32>
    %cst_46 = arith.constant dense<0.000000e+00> : vector<8x32xf32>
    %131 = tpu.matmul %130, %3, %cst_46 {dimension_numbers = #tpu.dot_dimension_numbers<[1], [0], [0], [1], [0, 0, 1, 1], [], []>} : vector<8x32xf32>, vector<32x32xf32>, vector<8x32xf32> -> vector<8x32xf32>
    %132 = vector.broadcast %4 : vector<1x32xf32> to vector<8x32xf32>
    %133 = arith.addf %131, %132 : vector<8x32xf32>
    %c0_47 = arith.constant 0 : index
    %c0_48 = arith.constant 0 : index
    %c0_49 = arith.constant 0 : index
    %134 = vector.load %arg7[%c0_47, %c0_48, %c0_49] : memref<1x8x32xf32, #tpu.memory_space<vmem>>, vector<1x8x32xf32>
    %135 = vector.shape_cast %134 : vector<1x8x32xf32> to vector<8x32xf32>
    %136 = vector.shape_cast %133 : vector<8x32xf32> to vector<1x8x32xf32>
    tpu.vector_store %arg7[%c0_47, %c0_48, %c0_49], %136 {strides = array<i32>} : memref<1x8x32xf32, #tpu.memory_space<vmem>>, vector<1x8x32xf32>,
    return
  }
  func.func @transform_0(%arg0: i32) -> (i32, i32, i32) {
    %c0_i32 = arith.constant 0 : i32
    %c0_i32_0 = arith.constant 0 : i32
    %c0_i32_1 = arith.constant 0 : i32
    return %arg0, %c0_i32, %c0_i32_0 : i32, i32, i32
  }
  func.func @transform_1(%arg0: i32) -> (i32, i32) {
    %c0_i32 = arith.constant 0 : i32
    %c0_i32_0 = arith.constant 0 : i32
    %c0_i32_1 = arith.constant 0 : i32
    return %c0_i32, %c0_i32_0 : i32, i32
  }
  func.func @transform_2(%arg0: i32) -> (i32, i32) {
    %c0_i32 = arith.constant 0 : i32
    %c0_i32_0 = arith.constant 0 : i32
    %c0_i32_1 = arith.constant 0 : i32
    return %c0_i32, %c0_i32_0 : i32, i32
  }
  func.func @transform_3(%arg0: i32) -> (i32, i32) {
    %c0_i32 = arith.constant 0 : i32
    %c0_i32_0 = arith.constant 0 : i32
    %c0_i32_1 = arith.constant 0 : i32
    return %c0_i32, %c0_i32_0 : i32, i32
  }
  func.func @transform_4(%arg0: i32) -> (i32, i32) {
    %c0_i32 = arith.constant 0 : i32
    %c0_i32_0 = arith.constant 0 : i32
    %c0_i32_1 = arith.constant 0 : i32
    return %c0_i32, %c0_i32_0 : i32, i32
  }
  func.func @transform_5(%arg0: i32) -> (i32, i32) {
    %c0_i32 = arith.constant 0 : i32
    %c0_i32_0 = arith.constant 0 : i32
    %c0_i32_1 = arith.constant 0 : i32
    return %c0_i32, %c0_i32_0 : i32, i32
  }
  func.func @transform_6(%arg0: i32) -> (i32, i32, i32) {
    %c0_i32 = arith.constant 0 : i32
    %c0_i32_0 = arith.constant 0 : i32
    %c0_i32_1 = arith.constant 0 : i32
    return %arg0, %c0_i32, %c0_i32_0 : i32, i32, i32
  }
}

module attributes {stable_mosaic.version = 11 : i64} {
  func.func @attention_kernel(%arg0: i32, %arg1: memref<1x8x32xf32, #tpu.memory_space<vmem>>, %arg2: memref<32x32xf32, #tpu.memory_space<vmem>>, %arg3: memref<32x32xf32, #tpu.memory_space<vmem>>, %arg4: memref<32x32xf32, #tpu.memory_space<vmem>>, %arg5: memref<32x32xf32, #tpu.memory_space<vmem>>, %arg6: memref<1x32xf32, #tpu.memory_space<vmem>>, %arg7: memref<1x8x32xf32, #tpu.memory_space<vmem>>) attributes {dimension_semantics = [#tpu.dimension_semantics<parallel>], iteration_bounds = array<i64: 2>, scalar_prefetch = 0 : i64, scratch_operands = 0 : i64, tpu.core_type = #tpu.core_type<tc>, window_params = [{transform_indices = @transform_0, window_bounds = array<i64: 1, 8, 32>}, {pipeline_mode = #tpu.pipeline_mode<synchronous>, transform_indices = @transform_1, window_bounds = array<i64: 32, 32>}, {pipeline_mode = #tpu.pipeline_mode<synchronous>, transform_indices = @transform_2, window_bounds = array<i64: 32, 32>}, {pipeline_mode = #tpu.pipeline_mode<synchronous>, transform_indices = @transform_3, window_bounds = array<i64: 32, 32>}, {pipeline_mode = #tpu.pipeline_mode<synchronous>, transform_indices = @transform_4, window_bounds = array<i64: 32, 32>}, {pipeline_mode = #tpu.pipeline_mode<synchronous>, transform_indices = @transform_5, window_bounds = array<i64: 1, 32>}, {transform_indices = @transform_6, window_bounds = array<i64: 1, 8, 32>}]} {
    %c0 = arith.constant 0 : index
    %c0_0 = arith.constant 0 : index
    %0 = vector.load %arg2[%c0, %c0_0] : memref<32x32xf32, #tpu.memory_space<vmem>>, vector<32x32xf32>
    %c0_1 = arith.constant 0 : index
    %c0_2 = arith.constant 0 : index
    %1 = vector.load %arg3[%c0_1, %c0_2] : memref<32x32xf32, #tpu.memory_space<vmem>>, vector<32x32xf32>
    %c0_3 = arith.constant 0 : index
    %c0_4 = arith.constant 0 : index
    %2 = vector.load %arg4[%c0_3, %c0_4] : memref<32x32xf32, #tpu.memory_space<vmem>>, vector<32x32xf32>
    %c0_5 = arith.constant 0 : index
    %c0_6 = arith.constant 0 : index
    %3 = vector.load %arg5[%c0_5, %c0_6] : memref<32x32xf32, #tpu.memory_space<vmem>>, vector<32x32xf32>
    %c0_7 = arith.constant 0 : index
    %c0_8 = arith.constant 0 : index
    %4 = vector.load %arg6[%c0_7, %c0_8] : memref<1x32xf32, #tpu.memory_space<vmem>>, vector<1x32xf32>
    %c0_9 = arith.constant 0 : index
    %c0_10 = arith.constant 0 : index
    %c0_11 = arith.constant 0 : index
    %5 = vector.load %arg1[%c0_9, %c0_10, %c0_11] : memref<1x8x32xf32, #tpu.memory_space<vmem>>, vector<1x8x32xf32>
    %6 = vector.shape_cast %5 : vector<1x8x32xf32> to vector<8x32xf32>
    %cst = arith.constant dense<0.000000e+00> : vector<8x32xf32>
    %7 = tpu.matmul %6, %0, %cst {dimension_numbers = #tpu.dot_dimension_numbers<[1], [0], [0], [1], [0, 0, 1, 1], [], []>} : vector<8x32xf32>, vector<32x32xf32>, vector<8x32xf32> -> vector<8x32xf32>
    %cst_12 = arith.constant dense<0.000000e+00> : vector<8x32xf32>
    %8 = tpu.matmul %6, %1, %cst_12 {dimension_numbers = #tpu.dot_dimension_numbers<[1], [0], [0], [1], [0, 0, 1, 1], [], []>} : vector<8x32xf32>, vector<32x32xf32>, vector<8x32xf32> -> vector<8x32xf32>
    %cst_13 = arith.constant dense<0.000000e+00> : vector<8x32xf32>
    %9 = tpu.matmul %6, %2, %cst_13 {dimension_numbers = #tpu.dot_dimension_numbers<[1], [0], [0], [1], [0, 0, 1, 1], [], []>} : vector<8x32xf32>, vector<32x32xf32>, vector<8x32xf32> -> vector<8x32xf32>
    %10 = vector.extract_strided_slice %7 {offsets = [0, 0], sizes = [8, 4], strides = [1, 1]} : vector<8x32xf32> to vector<8x4xf32>
    %11 = vector.extract_strided_slice %8 {offsets = [0, 0], sizes = [8, 4], strides = [1, 1]} : vector<8x32xf32> to vector<8x4xf32>
    %12 = vector.extract_strided_slice %9 {offsets = [0, 0], sizes = [8, 4], strides = [1, 1]} : vector<8x32xf32> to vector<8x4xf32>
    "tpu.trace_start"() <{level = 10 : i32, message = "nd,md->nm"}> : () -> ()
    %cst_14 = arith.constant dense<0.000000e+00> : vector<8x8xf32>
    %13 = tpu.matmul %10, %11, %cst_14 {dimension_numbers = #tpu.dot_dimension_numbers<[1], [1], [0], [0], [0, 0, 1, 0], [], []>} : vector<8x4xf32>, vector<8x4xf32>, vector<8x8xf32> -> vector<8x8xf32>
    "tpu.trace_stop"() : () -> ()
    %cst_15 = arith.constant dense<0xFF800000> : vector<8xf32>
    %14 = vector.multi_reduction <maximumf>, %13, %cst_15 [1] : vector<8x8xf32> to vector<8xf32>
    %15 = vector.shape_cast %14 : vector<8xf32> to vector<8x1xf32>
    %16 = vector.broadcast %15 : vector<8x1xf32> to vector<8x8xf32>
    %17 = arith.subf %13, %16 : vector<8x8xf32>
    %18 = math.exp %17 : vector<8x8xf32>
    %cst_16 = arith.constant dense<0.000000e+00> : vector<8xf32>
    %19 = vector.multi_reduction <add>, %18, %cst_16 [1] : vector<8x8xf32> to vector<8xf32>
    %20 = vector.shape_cast %19 : vector<8xf32> to vector<8x1xf32>
    %21 = tpu.reciprocal %20 {approx = true} : vector<8x1xf32> -> vector<8x1xf32>
    %22 = vector.broadcast %21 : vector<8x1xf32> to vector<8x8xf32>
    %23 = arith.mulf %18, %22 : vector<8x8xf32>
    %cst_17 = arith.constant dense<0.000000e+00> : vector<8x4xf32>
    %24 = tpu.matmul %23, %12, %cst_17 {dimension_numbers = #tpu.dot_dimension_numbers<[1], [0], [0], [1], [0, 0, 1, 1], [], []>} : vector<8x8xf32>, vector<8x4xf32>, vector<8x4xf32> -> vector<8x4xf32>
    %25 = vector.extract_strided_slice %7 {offsets = [0, 4], sizes = [8, 4], strides = [1, 1]} : vector<8x32xf32> to vector<8x4xf32>
    %26 = vector.extract_strided_slice %8 {offsets = [0, 4], sizes = [8, 4], strides = [1, 1]} : vector<8x32xf32> to vector<8x4xf32>
    %27 = vector.extract_strided_slice %9 {offsets = [0, 4], sizes = [8, 4], strides = [1, 1]} : vector<8x32xf32> to vector<8x4xf32>
    "tpu.trace_start"() <{level = 10 : i32, message = "nd,md->nm"}> : () -> ()
    %cst_18 = arith.constant dense<0.000000e+00> : vector<8x8xf32>
    %28 = tpu.matmul %25, %26, %cst_18 {dimension_numbers = #tpu.dot_dimension_numbers<[1], [1], [0], [0], [0, 0, 1, 0], [], []>} : vector<8x4xf32>, vector<8x4xf32>, vector<8x8xf32> -> vector<8x8xf32>
    "tpu.trace_stop"() : () -> ()
    %cst_19 = arith.constant dense<0xFF800000> : vector<8xf32>
    %29 = vector.multi_reduction <maximumf>, %28, %cst_19 [1] : vector<8x8xf32> to vector<8xf32>
    %30 = vector.shape_cast %29 : vector<8xf32> to vector<8x1xf32>
    %31 = vector.broadcast %30 : vector<8x1xf32> to vector<8x8xf32>
    %32 = arith.subf %28, %31 : vector<8x8xf32>
    %33 = math.exp %32 : vector<8x8xf32>
    %cst_20 = arith.constant dense<0.000000e+00> : vector<8xf32>
    %34 = vector.multi_reduction <add>, %33, %cst_20 [1] : vector<8x8xf32> to vector<8xf32>
    %35 = vector.shape_cast %34 : vector<8xf32> to vector<8x1xf32>
    %36 = tpu.reciprocal %35 {approx = true} : vector<8x1xf32> -> vector<8x1xf32>
    %37 = vector.broadcast %36 : vector<8x1xf32> to vector<8x8xf32>
    %38 = arith.mulf %33, %37 : vector<8x8xf32>
    %cst_21 = arith.constant dense<0.000000e+00> : vector<8x4xf32>
    %39 = tpu.matmul %38, %27, %cst_21 {dimension_numbers = #tpu.dot_dimension_numbers<[1], [0], [0], [1], [0, 0, 1, 1], [], []>} : vector<8x8xf32>, vector<8x4xf32>, vector<8x4xf32> -> vector<8x4xf32>
    %40 = vector.extract_strided_slice %7 {offsets = [0, 8], sizes = [8, 4], strides = [1, 1]} : vector<8x32xf32> to vector<8x4xf32>
    %41 = vector.extract_strided_slice %8 {offsets = [0, 8], sizes = [8, 4], strides = [1, 1]} : vector<8x32xf32> to vector<8x4xf32>
    %42 = vector.extract_strided_slice %9 {offsets = [0, 8], sizes = [8, 4], strides = [1, 1]} : vector<8x32xf32> to vector<8x4xf32>
    "tpu.trace_start"() <{level = 10 : i32, message = "nd,md->nm"}> : () -> ()
    %cst_22 = arith.constant dense<0.000000e+00> : vector<8x8xf32>
    %43 = tpu.matmul %40, %41, %cst_22 {dimension_numbers = #tpu.dot_dimension_numbers<[1], [1], [0], [0], [0, 0, 1, 0], [], []>} : vector<8x4xf32>, vector<8x4xf32>, vector<8x8xf32> -> vector<8x8xf32>
    "tpu.trace_stop"() : () -> ()
    %cst_23 = arith.constant dense<0xFF800000> : vector<8xf32>
    %44 = vector.multi_reduction <maximumf>, %43, %cst_23 [1] : vector<8x8xf32> to vector<8xf32>
    %45 = vector.shape_cast %44 : vector<8xf32> to vector<8x1xf32>
    %46 = vector.broadcast %45 : vector<8x1xf32> to vector<8x8xf32>
    %47 = arith.subf %43, %46 : vector<8x8xf32>
    %48 = math.exp %47 : vector<8x8xf32>
    %cst_24 = arith.constant dense<0.000000e+00> : vector<8xf32>
    %49 = vector.multi_reduction <add>, %48, %cst_24 [1] : vector<8x8xf32> to vector<8xf32>
    %50 = vector.shape_cast %49 : vector<8xf32> to vector<8x1xf32>
    %51 = tpu.reciprocal %50 {approx = true} : vector<8x1xf32> -> vector<8x1xf32>
    %52 = vector.broadcast %51 : vector<8x1xf32> to vector<8x8xf32>
    %53 = arith.mulf %48, %52 : vector<8x8xf32>
    %cst_25 = arith.constant dense<0.000000e+00> : vector<8x4xf32>
    %54 = tpu.matmul %53, %42, %cst_25 {dimension_numbers = #tpu.dot_dimension_numbers<[1], [0], [0], [1], [0, 0, 1, 1], [], []>} : vector<8x8xf32>, vector<8x4xf32>, vector<8x4xf32> -> vector<8x4xf32>
    %55 = vector.extract_strided_slice %7 {offsets = [0, 12], sizes = [8, 4], strides = [1, 1]} : vector<8x32xf32> to vector<8x4xf32>
    %56 = vector.extract_strided_slice %8 {offsets = [0, 12], sizes = [8, 4], strides = [1, 1]} : vector<8x32xf32> to vector<8x4xf32>
    %57 = vector.extract_strided_slice %9 {offsets = [0, 12], sizes = [8, 4], strides = [1, 1]} : vector<8x32xf32> to vector<8x4xf32>
    "tpu.trace_start"() <{level = 10 : i32, message = "nd,md->nm"}> : () -> ()
    %cst_26 = arith.constant dense<0.000000e+00> : vector<8x8xf32>
    %58 = tpu.matmul %55, %56, %cst_26 {dimension_numbers = #tpu.dot_dimension_numbers<[1], [1], [0], [0], [0, 0, 1, 0], [], []>} : vector<8x4xf32>, vector<8x4xf32>, vector<8x8xf32> -> vector<8x8xf32>
    "tpu.trace_stop"() : () -> ()
    %cst_27 = arith.constant dense<0xFF800000> : vector<8xf32>
    %59 = vector.multi_reduction <maximumf>, %58, %cst_27 [1] : vector<8x8xf32> to vector<8xf32>
    %60 = vector.shape_cast %59 : vector<8xf32> to vector<8x1xf32>
    %61 = vector.broadcast %60 : vector<8x1xf32> to vector<8x8xf32>
    %62 = arith.subf %58, %61 : vector<8x8xf32>
    %63 = math.exp %62 : vector<8x8xf32>
    %cst_28 = arith.constant dense<0.000000e+00> : vector<8xf32>
    %64 = vector.multi_reduction <add>, %63, %cst_28 [1] : vector<8x8xf32> to vector<8xf32>
    %65 = vector.shape_cast %64 : vector<8xf32> to vector<8x1xf32>
    %66 = tpu.reciprocal %65 {approx = true} : vector<8x1xf32> -> vector<8x1xf32>
    %67 = vector.broadcast %66 : vector<8x1xf32> to vector<8x8xf32>
    %68 = arith.mulf %63, %67 : vector<8x8xf32>
    %cst_29 = arith.constant dense<0.000000e+00> : vector<8x4xf32>
    %69 = tpu.matmul %68, %57, %cst_29 {dimension_numbers = #tpu.dot_dimension_numbers<[1], [0], [0], [1], [0, 0, 1, 1], [], []>} : vector<8x8xf32>, vector<8x4xf32>, vector<8x4xf32> -> vector<8x4xf32>
    %70 = vector.extract_strided_slice %7 {offsets = [0, 16], sizes = [8, 4], strides = [1, 1]} : vector<8x32xf32> to vector<8x4xf32>
    %71 = vector.extract_strided_slice %8 {offsets = [0, 16], sizes = [8, 4], strides = [1, 1]} : vector<8x32xf32> to vector<8x4xf32>
    %72 = vector.extract_strided_slice %9 {offsets = [0, 16], sizes = [8, 4], strides = [1, 1]} : vector<8x32xf32> to vector<8x4xf32>
    "tpu.trace_start"() <{level = 10 : i32, message = "nd,md->nm"}> : () -> ()
    %cst_30 = arith.constant dense<0.000000e+00> : vector<8x8xf32>
    %73 = tpu.matmul %70, %71, %cst_30 {dimension_numbers = #tpu.dot_dimension_numbers<[1], [1], [0], [0], [0, 0, 1, 0], [], []>} : vector<8x4xf32>, vector<8x4xf32>, vector<8x8xf32> -> vector<8x8xf32>
    "tpu.trace_stop"() : () -> ()
    %cst_31 = arith.constant dense<0xFF800000> : vector<8xf32>
    %74 = vector.multi_reduction <maximumf>, %73, %cst_31 [1] : vector<8x8xf32> to vector<8xf32>
    %75 = vector.shape_cast %74 : vector<8xf32> to vector<8x1xf32>
    %76 = vector.broadcast %75 : vector<8x1xf32> to vector<8x8xf32>
    %77 = arith.subf %73, %76 : vector<8x8xf32>
    %78 = math.exp %77 : vector<8x8xf32>
    %cst_32 = arith.constant dense<0.000000e+00> : vector<8xf32>
    %79 = vector.multi_reduction <add>, %78, %cst_32 [1] : vector<8x8xf32> to vector<8xf32>
    %80 = vector.shape_cast %79 : vector<8xf32> to vector<8x1xf32>
    %81 = tpu.reciprocal %80 {approx = true} : vector<8x1xf32> -> vector<8x1xf32>
    %82 = vector.broadcast %81 : vector<8x1xf32> to vector<8x8xf32>
    %83 = arith.mulf %78, %82 : vector<8x8xf32>
    %cst_33 = arith.constant dense<0.000000e+00> : vector<8x4xf32>
    %84 = tpu.matmul %83, %72, %cst_33 {dimension_numbers = #tpu.dot_dimension_numbers<[1], [0], [0], [1], [0, 0, 1, 1], [], []>} : vector<8x8xf32>, vector<8x4xf32>, vector<8x4xf32> -> vector<8x4xf32>
    %85 = vector.extract_strided_slice %7 {offsets = [0, 20], sizes = [8, 4], strides = [1, 1]} : vector<8x32xf32> to vector<8x4xf32>
    %86 = vector.extract_strided_slice %8 {offsets = [0, 20], sizes = [8, 4], strides = [1, 1]} : vector<8x32xf32> to vector<8x4xf32>
    %87 = vector.extract_strided_slice %9 {offsets = [0, 20], sizes = [8, 4], strides = [1, 1]} : vector<8x32xf32> to vector<8x4xf32>
    "tpu.trace_start"() <{level = 10 : i32, message = "nd,md->nm"}> : () -> ()
    %cst_34 = arith.constant dense<0.000000e+00> : vector<8x8xf32>
    %88 = tpu.matmul %85, %86, %cst_34 {dimension_numbers = #tpu.dot_dimension_numbers<[1], [1], [0], [0], [0, 0, 1, 0], [], []>} : vector<8x4xf32>, vector<8x4xf32>, vector<8x8xf32> -> vector<8x8xf32>
    "tpu.trace_stop"() : () -> ()
    %cst_35 = arith.constant dense<0xFF800000> : vector<8xf32>
    %89 = vector.multi_reduction <maximumf>, %88, %cst_35 [1] : vector<8x8xf32> to vector<8xf32>
    %90 = vector.shape_cast %89 : vector<8xf32> to vector<8x1xf32>
    %91 = vector.broadcast %90 : vector<8x1xf32> to vector<8x8xf32>
    %92 = arith.subf %88, %91 : vector<8x8xf32>
    %93 = math.exp %92 : vector<8x8xf32>
    %cst_36 = arith.constant dense<0.000000e+00> : vector<8xf32>
    %94 = vector.multi_reduction <add>, %93, %cst_36 [1] : vector<8x8xf32> to vector<8xf32>
    %95 = vector.shape_cast %94 : vector<8xf32> to vector<8x1xf32>
    %96 = tpu.reciprocal %95 {approx = true} : vector<8x1xf32> -> vector<8x1xf32>
    %97 = vector.broadcast %96 : vector<8x1xf32> to vector<8x8xf32>
    %98 = arith.mulf %93, %97 : vector<8x8xf32>
    %cst_37 = arith.constant dense<0.000000e+00> : vector<8x4xf32>
    %99 = tpu.matmul %98, %87, %cst_37 {dimension_numbers = #tpu.dot_dimension_numbers<[1], [0], [0], [1], [0, 0, 1, 1], [], []>} : vector<8x8xf32>, vector<8x4xf32>, vector<8x4xf32> -> vector<8x4xf32>
    %100 = vector.extract_strided_slice %7 {offsets = [0, 24], sizes = [8, 4], strides = [1, 1]} : vector<8x32xf32> to vector<8x4xf32>
    %101 = vector.extract_strided_slice %8 {offsets = [0, 24], sizes = [8, 4], strides = [1, 1]} : vector<8x32xf32> to vector<8x4xf32>
    %102 = vector.extract_strided_slice %9 {offsets = [0, 24], sizes = [8, 4], strides = [1, 1]} : vector<8x32xf32> to vector<8x4xf32>
    "tpu.trace_start"() <{level = 10 : i32, message = "nd,md->nm"}> : () -> ()
    %cst_38 = arith.constant dense<0.000000e+00> : vector<8x8xf32>
    %103 = tpu.matmul %100, %101, %cst_38 {dimension_numbers = #tpu.dot_dimension_numbers<[1], [1], [0], [0], [0, 0, 1, 0], [], []>} : vector<8x4xf32>, vector<8x4xf32>, vector<8x8xf32> -> vector<8x8xf32>
    "tpu.trace_stop"() : () -> ()
    %cst_39 = arith.constant dense<0xFF800000> : vector<8xf32>
    %104 = vector.multi_reduction <maximumf>, %103, %cst_39 [1] : vector<8x8xf32> to vector<8xf32>
    %105 = vector.shape_cast %104 : vector<8xf32> to vector<8x1xf32>
    %106 = vector.broadcast %105 : vector<8x1xf32> to vector<8x8xf32>
    %107 = arith.subf %103, %106 : vector<8x8xf32>
    %108 = math.exp %107 : vector<8x8xf32>
    %cst_40 = arith.constant dense<0.000000e+00> : vector<8xf32>
    %109 = vector.multi_reduction <add>, %108, %cst_40 [1] : vector<8x8xf32> to vector<8xf32>
    %110 = vector.shape_cast %109 : vector<8xf32> to vector<8x1xf32>
    %111 = tpu.reciprocal %110 {approx = true} : vector<8x1xf32> -> vector<8x1xf32>
    %112 = vector.broadcast %111 : vector<8x1xf32> to vector<8x8xf32>
    %113 = arith.mulf %108, %112 : vector<8x8xf32>
    %cst_41 = arith.constant dense<0.000000e+00> : vector<8x4xf32>
    %114 = tpu.matmul %113, %102, %cst_41 {dimension_numbers = #tpu.dot_dimension_numbers<[1], [0], [0], [1], [0, 0, 1, 1], [], []>} : vector<8x8xf32>, vector<8x4xf32>, vector<8x4xf32> -> vector<8x4xf32>
    %115 = vector.extract_strided_slice %7 {offsets = [0, 28], sizes = [8, 4], strides = [1, 1]} : vector<8x32xf32> to vector<8x4xf32>
    %116 = vector.extract_strided_slice %8 {offsets = [0, 28], sizes = [8, 4], strides = [1, 1]} : vector<8x32xf32> to vector<8x4xf32>
    %117 = vector.extract_strided_slice %9 {offsets = [0, 28], sizes = [8, 4], strides = [1, 1]} : vector<8x32xf32> to vector<8x4xf32>
    "tpu.trace_start"() <{level = 10 : i32, message = "nd,md->nm"}> : () -> ()
    %cst_42 = arith.constant dense<0.000000e+00> : vector<8x8xf32>
    %118 = tpu.matmul %115, %116, %cst_42 {dimension_numbers = #tpu.dot_dimension_numbers<[1], [1], [0], [0], [0, 0, 1, 0], [], []>} : vector<8x4xf32>, vector<8x4xf32>, vector<8x8xf32> -> vector<8x8xf32>
    "tpu.trace_stop"() : () -> ()
    %cst_43 = arith.constant dense<0xFF800000> : vector<8xf32>
    %119 = vector.multi_reduction <maximumf>, %118, %cst_43 [1] : vector<8x8xf32> to vector<8xf32>
    %120 = vector.shape_cast %119 : vector<8xf32> to vector<8x1xf32>
    %121 = vector.broadcast %120 : vector<8x1xf32> to vector<8x8xf32>
    %122 = arith.subf %118, %121 : vector<8x8xf32>
    %123 = math.exp %122 : vector<8x8xf32>
    %cst_44 = arith.constant dense<0.000000e+00> : vector<8xf32>
    %124 = vector.multi_reduction <add>, %123, %cst_44 [1] : vector<8x8xf32> to vector<8xf32>
    %125 = vector.shape_cast %124 : vector<8xf32> to vector<8x1xf32>
    %126 = tpu.reciprocal %125 {approx = true} : vector<8x1xf32> -> vector<8x1xf32>
    %127 = vector.broadcast %126 : vector<8x1xf32> to vector<8x8xf32>
    %128 = arith.mulf %123, %127 : vector<8x8xf32>
    %cst_45 = arith.constant dense<0.000000e+00> : vector<8x4xf32>
    %129 = tpu.matmul %128, %117, %cst_45 {dimension_numbers = #tpu.dot_dimension_numbers<[1], [0], [0], [1], [0, 0, 1, 1], [], []>} : vector<8x8xf32>, vector<8x4xf32>, vector<8x4xf32> -> vector<8x4xf32>
    %130 = tpu.concatenate %24, %39, %54, %69, %84, %99, %114, %129 in 1 : vector<8x4xf32>, vector<8x4xf32>, vector<8x4xf32>, vector<8x4xf32>, vector<8x4xf32>, vector<8x4xf32>, vector<8x4xf32>, vector<8x4xf32> -> vector<8x32xf32>
    %cst_46 = arith.constant dense<0.000000e+00> : vector<8x32xf32>
    %131 = tpu.matmul %130, %3, %cst_46 {dimension_numbers = #tpu.dot_dimension_numbers<[1], [0], [0], [1], [0, 0, 1, 1], [], []>} : vector<8x32xf32>, vector<32x32xf32>, vector<8x32xf32> -> vector<8x32xf32>
    %132 = vector.broadcast %4 : vector<1x32xf32> to vector<8x32xf32>
    %133 = arith.addf %131, %132 : vector<8x32xf32>
    %c0_47 = arith.constant 0 : index
    %c0_48 = arith.constant 0 : index
    %c0_49 = arith.constant 0 : index
    %134 = vector.load %arg7[%c0_47, %c0_48, %c0_49] : memref<1x8x32xf32, #tpu.memory_space<vmem>>, vector<1x8x32xf32>
    %135 = vector.shape_cast %134 : vector<1x8x32xf32> to vector<8x32xf32>
    %136 = vector.shape_cast %133 : vector<8x32xf32> to vector<1x8x32xf32>
    tpu.vector_store %arg7[%c0_47, %c0_48, %c0_49], %136 {strides = array<i32>} : memref<1x8x32xf32, #tpu.memory_space<vmem>>, vector<1x8x32xf32>,
    return
  }
  func.func @transform_0(%arg0: i32) -> (i32, i32, i32) {
    %c0_i32 = arith.constant 0 : i32
    %c0_i32_0 = arith.constant 0 : i32
    %c0_i32_1 = arith.constant 0 : i32
    return %arg0, %c0_i32, %c0_i32_0 : i32, i32, i32
  }
  func.func @transform_1(%arg0: i32) -> (i32, i32) {
    %c0_i32 = arith.constant 0 : i32
    %c0_i32_0 = arith.constant 0 : i32
    %c0_i32_1 = arith.constant 0 : i32
    return %c0_i32, %c0_i32_0 : i32, i32
  }
  func.func @transform_2(%arg0: i32) -> (i32, i32) {
    %c0_i32 = arith.constant 0 : i32
    %c0_i32_0 = arith.constant 0 : i32
    %c0_i32_1 = arith.constant 0 : i32
    return %c0_i32, %c0_i32_0 : i32, i32
  }
  func.func @transform_3(%arg0: i32) -> (i32, i32) {
    %c0_i32 = arith.constant 0 : i32
    %c0_i32_0 = arith.constant 0 : i32
    %c0_i32_1 = arith.constant 0 : i32
    return %c0_i32, %c0_i32_0 : i32, i32
  }
  func.func @transform_4(%arg0: i32) -> (i32, i32) {
    %c0_i32 = arith.constant 0 : i32
    %c0_i32_0 = arith.constant 0 : i32
    %c0_i32_1 = arith.constant 0 : i32
    return %c0_i32, %c0_i32_0 : i32, i32
  }
  func.func @transform_5(%arg0: i32) -> (i32, i32) {
    %c0_i32 = arith.constant 0 : i32
    %c0_i32_0 = arith.constant 0 : i32
    %c0_i32_1 = arith.constant 0 : i32
    return %c0_i32, %c0_i32_0 : i32, i32
  }
  func.func @transform_6(%arg0: i32) -> (i32, i32, i32) {
    %c0_i32 = arith.constant 0 : i32
    %c0_i32_0 = arith.constant 0 : i32
    %c0_i32_1 = arith.constant 0 : i32
    return %arg0, %c0_i32, %c0_i32_0 : i32, i32, i32
  }
}

</mosaic_0001>

<bundles_post_ra>
// kernel: _attention_impl.1
= control target key start
LH: loop header
LB: loop body
LE: loop exit
PB: predicated region body
PF: predicated region fallthrough
CT: control target
= control target key end

     0   :  { %11 = vsyncpa [#allocation3], 0  ;;  %s3334_s0 = inlined_call_operand.hbm [shape: f32[2,8,32], index: 0, kind: input, shape index: {}]   ;;  %s3335_s1 = inlined_call_operand.hbm [shape: f32[32,32], index: 1, kind: input, shape index: {}]   ;;  %s3336_s2 = inlined_call_operand.hbm [shape: f32[32,32], index: 2, kind: input, shape index: {}]   ;;  %s3337_s3 = inlined_call_operand.hbm [shape: f32[32,32], index: 3, kind: input, shape index: {}]   ;;  %s3338_s4 = inlined_call_operand.hbm [shape: f32[32,32], index: 4, kind: input, shape index: {}]   ;;  %s3339_s5 = inlined_call_operand.hbm [shape: f32[1,32], index: 5, kind: input, shape index: {}]   ;;  %s3340_s6 = inlined_call_operand.hbm [shape: f32[2,8,32], index: 6, kind: output, shape index: {}]  }
   0x1   :  { %13 = vsyncpa [#allocation3 + $0x1], 0 }
   0x2   :  { %14 = vsyncpa [#allocation6], 0 }
   0x3   :  { %15 = vsyncpa [#allocation9], 0 }
   0x4   :  { %16 = vsyncpa [#allocation12], 0 }
   0x5   :  { %17 = vsyncpa [#allocation4], 0 }
   0x6   :  { %19 = vsyncpa [#allocation4 + $0x1], 0  ;;  %s2850_s21 = smov 0   ;;  %s2852_s22 = smov 0  }
   0x7   :  { %s2854_s23 = smov 0   ;;  %s2856_s24 = smov 0  }
   0x8 LB: > { %s2789_s25 = smov [#allocation5]   ;;  %s2871_s27 = sadd.s32 4294967295, %s2787_s24   ;;  %s2787_s24 = sphi %s2856_s24, %s3365_s24   ;;  %s2783_s23 = sphi %s2854_s23, %s3364_s23   ;;  %s2779_s22 = sphi %s2852_s22, %s3363_s22   ;;  %s2775_s21 = sphi %s2850_s21, %s3362_s21  }
   0x9   : > { %s199_s26 = sshll.u32 %s2789_s25, 4  ;;  %p2141_p0 = scmp.ge.s32.totalorder %s2787_s24, 1  ;;  %s2876_s26 = int_to_ptr.vmem [resolvable:$true] %s199_s26 }
   0xa   : > { %p3341_p1 = scmp.eq.s32.totalorder %s2871_s27, 0  ;;  %p187_p2 = scmp.lt.s32.totalorder %s2787_s24, 3 }
   0xb   : > { %s2790_s29 = smov [#allocation8]   ;;  %s2791_s8 = smov [#allocation7]  }
   0xc   : > { %p2878_p3 = pnand %p2141_p0, %p187_p2  ;;  %s225_s30 = sshll.u32 %s2790_s29, 4  ;;  %s2891_s30 = int_to_ptr.vmem [resolvable:$true] %s225_s30 }
   0xd   : > { %s212_s9 = sshll.u32 %s2791_s8, 4  ;;  %s2539_s12 = scalar_lea.hbm %s3335_s1, 512  ;;  %s2893_s9 = int_to_ptr.vmem [resolvable:$true] %s212_s9 }
   0xe   : > { %s3344_s28 = scalar_select %p2878_p3, 1, 0 }
   0xf   : > { %p2415_p5 = pneg %p2878_p3  ;;  %p2540_p7 = scmp.ne.s32.totalorder %s3335_s1, %s2539_s12 }
  0x10   : > { %p2546_p11 = scmp.lt.u32.totalorder %s2539_s12, %s3335_s1 }
  0x11   : > { %p2887_p6 = pnand %p2415_p5, %p3341_p1 }
  0x13   : > { %p2903_p8 = pneg %p2887_p6 }
  0x15   : > { %p2542_p9 = pnand %p2903_p8, %p2540_p7 }
  0x17   : > { %p2543_p10 = pneg %p2542_p9 }
  0x19   : > { %p2548_p12 = pnand %p2546_p11, %p2543_p10 }
  0x1b   : > { %2551 = shalt.err (!%p2548_p12)
}
  0x1c   : > { %s2552_s18 = scalar_lea.vmem %s2876_s26, 512  ;;  %p2560_p5 = scmp.lt.s32.totalorder %s2876_s26, %s2876_s26 }
  0x1d   : > { %p2553_p13 = scmp.ne.s32.totalorder %s2876_s26, %s2552_s18  ;;  %p2561_p4 = scmp.lt.s32.totalorder %s2552_s18, %s2552_s18 }
  0x1f   : > { %p2555_p0 = pnand %p2553_p13, %p2903_p8  ;;  %p2562_p7 = por %p2561_p4, %p2560_p5 }
  0x21   : > { %p2556_p2 = pneg %p2555_p0 }
  0x23   : > { %p2563_p9 = pnand %p2562_p7, %p2556_p2 }
  0x25   : > { %2566 = shalt.err (!%p2563_p9)
}
  0x26   : > { %s2792_s19 = smov 128   ;;  %s2793_s20 = smov 8  }
  0x27   : > { %2418 = dma.hbm_to_vmem [thread:$0]  (!%p2887_p6), %s3335_s1, 512, %s2876_s26, [#allocation6], %s2792_s19, %s2792_s19, %s2793_s20  }
  0x28   : > { %s2567_s11 = scalar_lea.hbm %s3337_s3, 512 }
  0x29   : > { %p2568_p4 = scmp.ne.s32.totalorder %s3337_s3, %s2567_s11  ;;  %p2574_p12 = scmp.lt.u32.totalorder %s2567_s11, %s3337_s3 }
  0x2b   : > { %p2570_p10 = pnand %p2568_p4, %p2903_p8 }
  0x2d   : > { %p2571_p11 = pneg %p2570_p10 }
  0x2f   : > { %p2576_p13 = pnand %p2574_p12, %p2571_p11 }
  0x31   : > { %2579 = shalt.err (!%p2576_p13)
}
  0x32   : > { %s2580_s26 = scalar_lea.vmem %s2891_s30, 512  ;;  %p2588_p7 = scmp.lt.s32.totalorder %s2891_s30, %s2891_s30 }
  0x33   : > { %p2581_p0 = scmp.ne.s32.totalorder %s2891_s30, %s2580_s26  ;;  %p2589_p9 = scmp.lt.s32.totalorder %s2580_s26, %s2580_s26 }
  0x35   : > { %p2583_p2 = pnand %p2581_p0, %p2903_p8  ;;  %p2590_p4 = por %p2589_p9, %p2588_p7 }
  0x37   : > { %p2584_p5 = pneg %p2583_p2 }
  0x39   : > { %p2591_p10 = pnand %p2590_p4, %p2584_p5 }
  0x3b   : > { %2594 = shalt.err (!%p2591_p10)
}
  0x3c   : > { %2424 = dma.hbm_to_vmem [thread:$0]  (!%p2887_p6), %s3337_s3, 512, %s2891_s30, [#allocation9], %s2792_s19, %s2792_s19, %s2793_s20  }
  0x3d   : > { %s2595_s8 = scalar_lea.hbm %s3336_s2, 512 }
  0x3e   : > { %p2596_p11 = scmp.ne.s32.totalorder %s3336_s2, %s2595_s8  ;;  %p2602_p0 = scmp.lt.u32.totalorder %s2595_s8, %s3336_s2 }
  0x40   : > { %p2598_p12 = pnand %p2596_p11, %p2903_p8 }
  0x42   : > { %p2599_p13 = pneg %p2598_p12 }
  0x44   : > { %p2604_p2 = pnand %p2602_p0, %p2599_p13 }
  0x46   : > { %2607 = shalt.err (!%p2604_p2)
}
  0x47   : > { %s2608_s30 = scalar_lea.vmem %s2893_s9, 512  ;;  %p2616_p4 = scmp.lt.s32.totalorder %s2893_s9, %s2893_s9 }
  0x48   : > { %p2609_p5 = scmp.ne.s32.totalorder %s2893_s9, %s2608_s30  ;;  %p2617_p10 = scmp.lt.s32.totalorder %s2608_s30, %s2608_s30 }
  0x4a   : > { %p2611_p7 = pnand %p2609_p5, %p2903_p8  ;;  %p2618_p11 = por %p2617_p10, %p2616_p4 }
  0x4c   : > { %p2612_p9 = pneg %p2611_p7 }
  0x4e   : > { %p2619_p12 = pnand %p2618_p11, %p2612_p9 }
  0x50   : > { %2622 = shalt.err (!%p2619_p12)
}
  0x51   : > { %2421 = dma.hbm_to_vmem [thread:$0]  (!%p2887_p6), %s3336_s2, 512, %s2893_s9, [#allocation6], %s2792_s19, %s2792_s19, %s2793_s20  }
  0x52   : > { %s2794_s26 = smov [#allocation10]   ;;  %s2795_s18 = smov [#allocation11]  }
  0x53   : > { %s238_s17 = sshll.u32 %s2794_s26, 4  ;;  %s252_s25 = sshll.u32 %s2795_s18, 4  ;;  %s239_s17 = int_to_ptr.vmem [resolvable:$true] %s238_s17  ;;  %s253_s25 = int_to_ptr.vmem [resolvable:$true] %s252_s25 }
  0x54   : > { %s2623_s10 = scalar_lea.hbm %s3338_s4, 512 }
  0x55   : > { %p2624_p13 = scmp.ne.s32.totalorder %s3338_s4, %s2623_s10  ;;  %p2630_p5 = scmp.lt.u32.totalorder %s2623_s10, %s3338_s4 }
  0x57   : > { %p2626_p0 = pnand %p2624_p13, %p2903_p8 }
  0x59   : > { %p2627_p2 = pneg %p2626_p0 }
  0x5b   : > { %p2632_p7 = pnand %p2630_p5, %p2627_p2 }
  0x5d   : > { %2635 = shalt.err (!%p2632_p7)
}
  0x5e   : > { %s2636_s9 = scalar_lea.vmem %s239_s17, 512  ;;  %p2644_p11 = scmp.lt.s32.totalorder %s239_s17, %s239_s17 }
  0x5f   : > { %p2637_p9 = scmp.ne.s32.totalorder %s239_s17, %s2636_s9  ;;  %p2645_p12 = scmp.lt.s32.totalorder %s2636_s9, %s2636_s9 }
  0x61   : > { %p2639_p4 = pnand %p2637_p9, %p2903_p8  ;;  %p2646_p1 = por %p2645_p12, %p2644_p11 }
  0x63   : > { %p2640_p10 = pneg %p2639_p4 }
  0x65   : > { %p2647_p3 = pnand %p2646_p1, %p2640_p10 }
  0x67   : > { %2650 = shalt.err (!%p2647_p3)
}
  0x68   : > { %2427 = dma.hbm_to_vmem [thread:$0]  (!%p2887_p6), %s3338_s4, 512, %s239_s17, [#allocation9], %s2792_s19, %s2792_s19, %s2793_s20  }
  0x69   : > { %s2651_s29 = scalar_lea.hbm %s3339_s5, 16 }
  0x6a   : > { %p2652_p1 = scmp.ne.s32.totalorder %s3339_s5, %s2651_s29  ;;  %p2658_p0 = scmp.lt.u32.totalorder %s2651_s29, %s3339_s5 }
  0x6c   : > { %p2654_p3 = pnand %p2652_p1, %p2903_p8 }
  0x6e   : > { %p2655_p13 = pneg %p2654_p3 }
  0x70   : > { %p2660_p2 = pnand %p2658_p0, %p2655_p13 }
  0x72   : > { %2663 = shalt.err (!%p2660_p2)
}
  0x73   : > { %s2664_s13 = scalar_lea.vmem %s253_s25, 16  ;;  %s2671_s19 = scalar_lea.vmem %s253_s25, 32 }
  0x74   : > { %p2665_p5 = scmp.ne.s32.totalorder %s253_s25, %s2664_s13  ;;  %p2672_p4 = scmp.lt.s32.totalorder %s253_s25, %s253_s25 }
  0x75   : > { %p2673_p10 = scmp.lt.s32.totalorder %s2671_s19, %s2664_s13 }
  0x76   : > { %p2667_p7 = pnand %p2665_p5, %p2903_p8 }
  0x77   : > { %p2674_p11 = por %p2673_p10, %p2672_p4 }
  0x78   : > { %p2668_p9 = pneg %p2667_p7 }
  0x7a   : > { %p2675_p12 = pnand %p2674_p11, %p2668_p9 }
  0x7c   : > { %2678 = shalt.err (!%p2675_p12)
}
  0x7d   : > { %2430 = dma.hbm_to_vmem [thread:$0]  (!%p2887_p6), %s3339_s5, 16, %s253_s25, [#allocation12]  }
  0x7e   : > { %s2140_s15 = sadd.s32 4294967294, %s2787_s24   ;;  %s3020_s7 = sadd.s32 1, %s2787_s24  }
  0x7f   : > { %s32_s30 = sadd.s32 1, %s2783_s23  ;;  %s29_s9 = ssub.s32 %s2787_s24, %s3020_s7 }
  0x80   : > { %p39_p8 = scmp.ne.s32.totalorder %s2783_s23, %s2779_s22  ;;  %p30_p1 = scmp.eq.s32.totalorder %s29_s9, 0 }
  0x81   : > { %p40_p3 = scmp.eq.s32.totalorder %s2787_s24, 0  ;;  %p45_p13 = scmp.ne.s32.totalorder %s2779_s22, %s2775_s21 }
  0x82   : > { %p174_p0 = scmp.eq.s32.totalorder %s2871_s27, 1  ;;  %p3347_p5 = scmp.eq.s32.totalorder %s2871_s27, 0 }
  0x83   : > { %s3032_s14 = scalar_select %p30_p1, %s2783_s23, %s32_s30  }
  0x84   : > { %p41_p2 = por %p40_p3, %p39_p8  ;;  %p3036_p7 = por %p3347_p5, %p45_p13 }
  0x85   : > { %p3040_p6 = por %p174_p0, %p39_p8  ;;  %p180_p9 = scmp.eq.s32.totalorder %s2140_s15, 1 }
  0x86   : > { %p2444_p4 = scmp.lt.s32.totalorder %s2787_s24, 2  ;;  %s263_s26 = sand.u32 1, %s2783_s23  }
  0x87   : > { %s3349_s25 = scalar_select %p3040_p6, 1, 0 }
  0x88   : > { %p3046_p10 = por %p180_p9, %p45_p13  ;;  %s2148_s29 = sshll.u32 %s263_s26, 3 }
  0x89   : > { %s2149_s8 = sshll.u32 %s2787_s24, 7  ;;  %s267_s13 = scalar_lea.vmem [#allocation2], %s2148_s29 }
  0x8a   : > { %s3350_s18 = scalar_select %p3046_p10, 1, 0 }
  0x8b   : > { %s3054_s12 = scalar_lea.hbm %s3334_s0, %s2149_s8  ;;  %s274_s19 = sshll.u32 %s267_s13, 4  ;;  %s3060_s19 = int_to_ptr.vmem [resolvable:$true] %s274_s19 }
  0x8c   : > { %p3056_p11 = pnand %p2444_p4, %p41_p2  ;;  %s264_s17 = scalar_lea.sflag [#allocation3], %s263_s26 }
  0x8d   : > { %s2679_s15 = scalar_lea.hbm %s3054_s12, 128  ;;  %s2684_s29 = scalar_lea.hbm %s3334_s0, 256 }
  0x8e   : > { %p2680_p12 = scmp.ne.s32.totalorder %s3054_s12, %s2679_s15  ;;  %p2681_p8 = pneg %p3056_p11 }
  0x8f   : > { %p2685_p13 = scmp.lt.u32.totalorder %s3054_s12, %s3334_s0  ;;  %p2686_p0 = scmp.lt.u32.totalorder %s2684_s29, %s2679_s15 }
  0x90   : > { %p2682_p1 = pnand %p2681_p8, %p2680_p12  ;;  %p2688_p5 = scmp.lt.u32.totalorder %s2679_s15, %s3054_s12 }
  0x91   : > { %p2687_p2 = por %p2686_p0, %p2685_p13 }
  0x92   : > { %p2683_p3 = pneg %p2682_p1 }
  0x93   : > { %p2689_p9 = por %p2688_p5, %p2687_p2 }
  0x95   : > { %p2690_p4 = pnand %p2689_p9, %p2683_p3 }
  0x97   : > { %2693 = shalt.err (!%p2690_p4)
}
  0x98   : > { %s2694_s26 = scalar_lea.vmem %s3060_s19, 128  ;;  %s2796_s11 = smov [#allocation2]  }
  0x99   : > { %p2695_p12 = scmp.ne.s32.totalorder %s3060_s19, %s2694_s26  ;;  %s2699_s13 = sshll.u32 %s2796_s11, 4  ;;  %s2700_s13 = int_to_ptr.vmem [resolvable:$false] %s2699_s13 }
  0x9a   : > { %s2701_s30 = scalar_lea.vmem %s2700_s13, 256  ;;  %p2702_p6 = scmp.lt.s32.totalorder %s3060_s19, %s2700_s13 }
  0x9b   : > { %p2697_p1 = pnand %p2695_p12, %p2681_p8  ;;  %p2703_p13 = scmp.lt.s32.totalorder %s2701_s30, %s2694_s26 }
  0x9d   : > { %p2698_p10 = pneg %p2697_p1  ;;  %p2704_p0 = por %p2703_p13, %p2702_p6 }
  0x9f   : > { %p2705_p2 = pnand %p2704_p0, %p2698_p10 }
  0xa1   : > { %2708 = shalt.err (!%p2705_p2)
}
  0xa2   : > { %2434 = dma.hbm_to_vmem [thread:$0]  (!%p3056_p11), %s3054_s12, 128, %s3060_s19, %s264_s17  }
  0xa3   : > { %p3352_p3 = scmp.ne.s32.totalorder %s3344_s28, 0 }
  0xa4   : > { %s3090_s15 = sand.u32 (!%p3352_p3), 1, %s2779_s22  }
  0xa5   : > { %283 = sbr.rel (%p3352_p3) target bundleno = 2106 (0x83a), region = 44  ;;  %s2151_s9 = sshll.u32 (!%p3352_p3), %s3090_s15, 3 }
  0xa6   : > { %s286_s29 = scalar_lea.sflag (!%p3352_p3), [#allocation3], %s3090_s15  ;;  %s3096_s8 = scalar_lea.vmem (!%p3352_p3), [#allocation2], %s2151_s9 }
  0xac   : > { %2754 = dma.done.wait (%p3036_p7), %s286_s29, 128  }
  0xad   : > { %2756 = vsyncadd (%p3036_p7), %s286_s29, 4294967168  ;;  %p3353_p6 = scmp.eq.s32.totalorder %s2871_s27, 0 }
  0xaf   : > { %2758 = dma.done.wait (%p3353_p6), [#allocation6], 1024   ;;  %p3354_p10 = pmov %p3353_p6 }
  0xb0   : > { %p3355_p11 = pmov %p3353_p6 }
  0xb1   : > { %2760 = vsyncadd (%p3354_p10), [#allocation6], 4294966272 }
  0xb2   : > { %2762 = dma.done.wait (%p3355_p11), [#allocation9], 1024   ;;  %p3356_p8 = pmov %p3353_p6 }
  0xb3   : > { %p3357_p5 = pmov %p3353_p6 }
  0xb4   : > { %2764 = vsyncadd (%p3356_p8), [#allocation9], 4294966272 }
  0xb5   : > { %2766 = dma.done.wait (%p3357_p5), [#allocation12], 16   ;;  %p3358_p9 = pmov %p3357_p5 }
  0xb6   : > { %v2797_v0 = vmov 0.0|0.0   ;;  %vm2798_vm0 = vmmov 0   ;;  %v2799_v1 = vmov 0.0   ;;  %v342_v2 = vld [vmem:[#allocation7] sm:$0xff]  ;;  %v343_v3 = vld [vmem:[#allocation7 + $0x8] sm:$0xff]  ;;  %v344_v7 = vld [vmem:[#allocation7 + $0x10] sm:$0xff] }
  0xb7   : > { %2768 = vsyncadd (%p3358_p9), [#allocation12], 4294967280  ;;  %2373 = vmatprep.subr.bf16.mxu1 %v2797_v0  ;;  %2367 = vmatprep.subr.bf16.mxu0 %v2797_v0  ;;  %v338_v4 = vld [vmem:[#allocation5] sm:$0xff]  ;;  %v2374_v5 = vpack.c.bf16 %v343_v3, %v342_v2  ;;  %v339_v6 = vld [vmem:[#allocation5 + $0x8] sm:$0xff]  ;;  %vm356_vm1 = vcmask 261120   ;;  %vm570_vm2 = vcmask 31744  }
  0xb8   : > { %2262 = vmatprep.mubr.msk.f32.mxu1 %vm2798_vm0, %v2799_v1  ;;  %2251 = vmatprep.mubr.msk.f32.mxu0 %vm2798_vm0, %v2799_v1  ;;  %v345_v8 = vld [vmem:[#allocation7 + $0x18] sm:$0xff]  ;;  %v2368_v9 = vpack.c.bf16 %v339_v6, %v338_v4  ;;  %v340_v10 = vld [vmem:[#allocation5 + $0x10] sm:$0xff]  ;;  %s2800_s28 = smov 124   ;;  %s2801_s16 = smov 120   ;;  %v346_v19 = vld [vmem:[#allocation8] sm:$0xff]  ;;  %vm647_vm3 = vcmask 64512  }
  0xb9   : > { %v341_v11 = vld [vmem:[#allocation5 + $0x18] sm:$0xff]  ;;  %2375 = vmatpush3.bf16.msra.mxu1 %v2374_v5  ;;  %v2377_v12 = vpack.c.bf16 %v345_v8, %v344_v7  ;;  %s2802_s12 = smov 116   ;;  %s2803_s19 = smov 112   ;;  %v347_v20 = vld [vmem:[#allocation8 + $0x8] sm:$0xff]  ;;  %v348_v21 = vld [vmem:[#allocation8 + $0x10] sm:$0xff]  ;;  %vm1918_vm4 = vcmask 97280  }
  0xba   : > { %2369 = vmatpush3.bf16.msra.mxu0 %v2368_v9  ;;  %2376 = vmatprep.subr.bf16.mxu1 %v2797_v0  ;;  %v2371_v13 = vpack.c.bf16 %v341_v11, %v340_v10  ;;  %v355_v14 = vld [vmem:[%s3096_s8] sm:$0xff]  ;;  %s2804_s20 = smov 108   ;;  %s2805_s17 = smov 104   ;;  %v2380_v22 = vpack.c.bf16 %v347_v20, %v346_v19  ;;  %vm1920_vm5 = vcmask 130048   ;;  %vm1922_vm6 = vcmask 162816  }
  0xbb   : > { %2370 = vmatprep.subr.bf16.mxu0 %v2797_v0  ;;  %s2806_s10 = smov 100   ;;  %v349_v23 = vld [vmem:[#allocation8 + $0x18] sm:$0xff]  ;;  %s2807_s26 = smov 4   ;;  %vm1924_vm7 = vcmask 195584   ;;  %vm1926_vm8 = vcmask 228352  }
  0xbc   : > { %v2383_v24 = vpack.c.bf16 %v349_v23, %v348_v21  ;;  %s2808_s11 = smov 8   ;;  %s2809_s13 = smov 12  }
  0xbd   : > { %2378 = vmatpush3.bf16.msra.mxu1 %v2377_v12  ;;  %s2810_s30 = smov 16   ;;  %s2811_s29 = smov 20  }
  0xbe   : > { %2372 = vmatpush3.bf16.msra.mxu0 %v2371_v13  ;;  %2276 = vmatprep.subr.mxu1 %v2799_v1  ;;  %s2812_s8 = smov 24   ;;  %p3359_p4 = scmp.ne.s32.totalorder %s3349_s25, 0 }
  0xbf   : > { %2379 = vmatprep.subr.bf16.mxu0 %v2797_v0 }
  0xc0   : > { %2263 = vmatmul.mubr.msk.f32.vlgmr.msra.gmra.mrb[0].mxu1 %vm356_vm1, %v355_v14 }
  0xc1   : > { %2252 = vmatmul.mubr.msk.f32.vlgmr.msra.gmra.mrb[0].mxu0 %vm356_vm1, %v355_v14  ;;  %2278 = vmatprep.mubr.msk.f32.mxu1 %vm2798_vm0, %v2799_v1 }
  0xc2   : > { %2273 = vmatprep.mubr.msk.f32.mxu0 %vm2798_vm0, %v2799_v1  ;;  %2381 = vmatpush3.bf16.msra.mxu0 %v2380_v22 }
  0xc3   : > { %2382 = vmatprep.subr.bf16.mxu0 %v2797_v0 }
  0xc6   : > { %2384 = vmatpush3.bf16.msra.mxu0 %v2383_v24 }
  0xc7   : > { %2296 = vmatprep.subr.mxu0 %v2799_v1 }
  0xc9   : > { %2274 = vmatmul.mubr.msk.f32.vlgmr.msra.gmra.mrb[2].mxu0 %vm356_vm1, %v355_v14 }
  0xca   : > { %2298 = vmatprep.mubr.msk.f32.mxu0 %vm2798_vm0, %v2799_v1 }
 0x193   : > { %v496_v15 = vpop.f32.mrb[0].mxu1 }
 0x194   : > { %734 = vrot.lane.b32.xlu1 %v496_v15, %s2800_s28  ;;  %v2264_v16 = vpop.f32.mrb[1].mxu1  ;;  %2277 = vmatpush3.xpose.msk.msra.mxu1 %vm570_vm2, %v496_v15  ;;  %v426_v17 = vpop.f32.mrb[0].mxu0 }
 0x195   : > { %v2253_v18 = vpop.f32.mrb[1].mxu0  ;;  %2281 = vmatprep.subr.mxu1 %v2799_v1 }
 0x197   : > { %2279 = vmatmul.mubr.msk.f32.vlgmr.msra.gmra.mrb[2].mxu1 %vm570_vm2, %v426_v17 }
 0x198   : > { %732 = vrot.lane.b32.xlu1 %v426_v17, %s2800_s28  ;;  %2283 = vmatprep.mubr.msk.f32.mxu1 %vm2798_vm0, %v2799_v1 }
 0x19c   : > { %898 = vrot.lane.b32.xlu1 %v426_v17, %s2801_s16  ;;  %v3153_v33 = vpop.f32.mrb[2].mxu0 }
 0x19d   : > { %2282 = vmatpush3.msra.mxu1 %v3153_v33  ;;  %v2275_v34 = vpop.f32.mrb[3].mxu0 }
 0x19e   : > { %2286 = vmatprep.subr.mxu1 %v2799_v1 }
 0x1a0   : > { %1065 = vrot.lane.b32.xlu1 %v496_v15, %s2802_s12 }
 0x1a4   : > { %1063 = vrot.lane.b32.xlu1 %v426_v17, %s2802_s12 }
 0x1a8   : > { %1230 = vrot.lane.b32.xlu1 %v496_v15, %s2803_s19 }
 0x1ac   : > { %1228 = vrot.lane.b32.xlu1 %v426_v17, %s2803_s19 }
 0x1b0   : > { %1395 = vrot.lane.b32.xlu1 %v496_v15, %s2804_s20 }
 0x1b4   : > { %1560 = vrot.lane.b32.xlu1 %v496_v15, %s2805_s17 }
 0x1b8   : > { %1725 = vrot.lane.b32.xlu1 %v496_v15, %s2806_s10 }
 0x206   : > { %v735_v35 = vpop.permute.xlu1 %734 }
 0x20a   : > { %v733_v36 = vpop.permute.xlu1 %732 }
 0x20e   : > { %v899_v37 = vpop.permute.xlu1 %898 }
 0x212   : > { %v1066_v38 = vpop.permute.xlu1 %1065 }
 0x216   : > { %v1064_v39 = vpop.permute.xlu1 %1063 }
 0x21a   : > { %v1231_v40 = vpop.permute.xlu1 %1230 }
 0x21e   : > { %v1229_v43 = vpop.permute.xlu1 %1228 }
 0x222   : > { %v1396_v45 = vpop.permute.xlu1 %1395 }
 0x226   : > { %v1561_v48 = vpop.permute.xlu1 %1560 }
 0x22a   : > { %v1726_v50 = vpop.permute.xlu1 %1725 }
 0x26a   : > { %v643_v25 = vpop.f32.mrb[2].mxu1 }
 0x26b   : > { %v2280_v26 = vpop.f32.mrb[3].mxu1  ;;  %v648_v27 = vsel %vm647_vm3, %v643_v25, -inf }
 0x26c   : > { %649 = vmax.xlane.f32.xlu0 %v648_v27 }
 0x2f9   : > { %v650_v28 = vpop.xlane.xlu0 %649 }
 0x2fa   : > { %v651_v29 = vsub.f32 %v643_v25, %v650_v28 }
 0x2fc   : > { %v652_v30 = vmul.f32 1.442695, %v651_v29 }
 0x2fe   : > { %2507 = vpow2.f32 %v652_v30 }
 0x308   : > { %v2508_v31 = vpop.eup %2507 }
 0x309   : > { %v654_v32 = vsel %vm647_vm3, %v2508_v31, 0.0 }
 0x30a   : > { %655 = vadd.xlane.f32.xlu0 %v654_v32 }
 0x320   : > { %900 = vrot.lane.b32.xlu0 %v496_v15, %s2801_s16 }
 0x324   : > { %1393 = vrot.lane.b32.xlu0 %v426_v17, %s2804_s20 }
 0x328   : > { %1558 = vrot.lane.b32.xlu0 %v426_v17, %s2805_s17 }
 0x32c   : > { %1723 = vrot.lane.b32.xlu0 %v426_v17, %s2806_s10 }
 0x397   : > { %v656_v41 = vpop.xlane.xlu0 %655 }
 0x398   : > { %2509 = vrcp.f32 %v656_v41 }
 0x39b   : > { %v901_v42 = vpop.permute.xlu0 %900 }
 0x39c   : > { %2297 = vmatpush3.xpose.msk.msra.mxu0 %vm570_vm2, %v901_v42 }
 0x39d   : > { %2306 = vmatprep.subr.mxu0 %v2799_v1 }
 0x39f   : > { %2299 = vmatmul.mubr.msk.f32.vlgmr.msra.gmra.mrb[4].mxu0 %vm570_vm2, %v899_v37  ;;  %v1394_v47 = vpop.permute.xlu0 %1393 }
 0x3a0   : > { %2307 = vmatpush3.xpose.msk.msra.mxu0 %vm570_vm2, %v1066_v38  ;;  %2308 = vmatprep.mubr.msk.f32.mxu0 %vm2798_vm0, %v2799_v1 }
 0x3a1   : > { %2316 = vmatprep.subr.mxu0 %v2799_v1 }
 0x3a2   : > { %v2510_v44 = vpop.eup %2509 }
 0x3a3   : > { %v658_v46 = vmul.f32 %v2510_v44, %v2508_v31  ;;  %2309 = vmatmul.mubr.msk.f32.vlgmr.msra.gmra.mrb[6].mxu0 %vm570_vm2, %v1064_v39  ;;  %v1559_v49 = vpop.permute.xlu0 %1558 }
 0x3a4   : > { %2317 = vmatpush3.xpose.msk.msra.mxu0 %vm570_vm2, %v1231_v40  ;;  %2318 = vmatprep.mubr.msk.f32.mxu0 %vm2798_vm0, %v2799_v1 }
 0x3a5   : > { %2284 = vmatmul.mubr.msk.f32.vlgmr.msra.gmra.mrb[4].mxu1 %vm647_vm3, %v658_v46  ;;  %2326 = vmatprep.subr.mxu0 %v2799_v1 }
 0x3a6   : > { %2287 = vmatpush3.xpose.msk.msra.mxu1 %vm570_vm2, %v735_v35  ;;  %2288 = vmatprep.mubr.msk.f32.mxu1 %vm2798_vm0, %v2799_v1 }
 0x3a7   : > { %2319 = vmatmul.mubr.msk.f32.vlgmr.msra.gmra.mrb[8].mxu0 %vm570_vm2, %v1229_v43  ;;  %2291 = vmatprep.subr.mxu1 %v2799_v1  ;;  %v1724_v51 = vpop.permute.xlu0 %1723 }
 0x3a8   : > { %2327 = vmatpush3.xpose.msk.msra.mxu0 %vm570_vm2, %v1396_v45  ;;  %2328 = vmatprep.mubr.msk.f32.mxu0 %vm2798_vm0, %v2799_v1 }
 0x3a9   : > { %2289 = vmatmul.mubr.msk.f32.vlgmr.msra.gmra.mrb[6].mxu1 %vm570_vm2, %v733_v36  ;;  %2336 = vmatprep.subr.mxu0 %v2799_v1 }
 0x3aa   : > { %2293 = vmatprep.mubr.msk.f32.mxu1 %vm2798_vm0, %v2799_v1 }
 0x3ab   : > { %2329 = vmatmul.mubr.msk.f32.vlgmr.msra.gmra.mrb[10].mxu0 %vm570_vm2, %v1394_v47 }
 0x3ac   : > { %2337 = vmatpush3.xpose.msk.msra.mxu0 %vm570_vm2, %v1561_v48  ;;  %2338 = vmatprep.mubr.msk.f32.mxu0 %vm2798_vm0, %v2799_v1 }
 0x3ad   : > { %2346 = vmatprep.subr.mxu0 %v2799_v1 }
 0x3af   : > { %2339 = vmatmul.mubr.msk.f32.vlgmr.msra.gmra.mrb[12].mxu0 %vm570_vm2, %v1559_v49 }
 0x3b0   : > { %2347 = vmatpush3.xpose.msk.msra.mxu0 %vm570_vm2, %v1726_v50  ;;  %2348 = vmatprep.mubr.msk.f32.mxu0 %vm2798_vm0, %v2799_v1 }
 0x3b1   : > { %2385 = vmatprep.subr.bf16.mxu0 %v2797_v0 }
 0x3b3   : > { %2349 = vmatmul.mubr.msk.f32.vlgmr.msra.gmra.mrb[14].mxu0 %vm570_vm2, %v1724_v51 }
 0x3b4   : > { %2364 = vmatprep.mubr.msk.f32.mxu0 %vm2798_vm0, %v2799_v1 }
 0x472   : > { %v972_v52 = vpop.f32.mrb[4].mxu0 }
 0x473   : > { %v2300_v53 = vpop.f32.mrb[5].mxu0  ;;  %v976_v54 = vsel %vm647_vm3, %v972_v52, -inf }
 0x474   : > { %977 = vmax.xlane.f32.xlu0 %v976_v54 }
 0x476   : > { %v1137_v55 = vpop.f32.mrb[6].mxu0 }
 0x477   : > { %v2310_v56 = vpop.f32.mrb[7].mxu0  ;;  %v1141_v57 = vsel %vm647_vm3, %v1137_v55, -inf }
 0x478   : > { %v3201_v58 = vpop.f32.mrb[4].mxu1  ;;  %1142 = vmax.xlane.f32.xlu0 %v1141_v57 }
 0x479   : > { %v2285_v59 = vpop.f32.mrb[5].mxu1 }
 0x47a   : > { %v1302_v60 = vpop.f32.mrb[8].mxu0 }
 0x47b   : > { %v2320_v61 = vpop.f32.mrb[9].mxu0  ;;  %v1306_v6 = vsel %vm647_vm3, %v1302_v60, -inf }
 0x47c   : > { %v3203_v62 = vpop.f32.mrb[6].mxu1 }
 0x47d   : > { %v2290_v63 = vpop.f32.mrb[7].mxu1  ;;  %v810_v2 = vsel %vm647_vm3, %v3203_v62, -inf }
 0x47e   : > { %811 = vmax.xlane.f32.xlu1 %v810_v2  ;;  %v1467_v3 = vpop.f32.mrb[10].mxu0 }
 0x47f   : > { %v2330_v4 = vpop.f32.mrb[11].mxu0  ;;  %v1471_v5 = vsel %vm647_vm3, %v1467_v3, -inf }
 0x480   : > { %1472 = vmax.xlane.f32.xlu0 %v1471_v5 }
 0x482   : > { %1307 = vmax.xlane.f32.xlu1 %v1306_v6  ;;  %v1632_v7 = vpop.f32.mrb[12].mxu0 }
 0x483   : > { %v2340_v8 = vpop.f32.mrb[13].mxu0  ;;  %v1636_v9 = vsel %vm647_vm3, %v1632_v7, -inf }
 0x486   : > { %1637 = vmax.xlane.f32.xlu1 %v1636_v9  ;;  %v1797_v10 = vpop.f32.mrb[14].mxu0 }
 0x487   : > { %v2350_v11 = vpop.f32.mrb[15].mxu0  ;;  %v1801_v12 = vsel %vm647_vm3, %v1797_v10, -inf }
 0x488   : > { %1802 = vmax.xlane.f32.xlu0 %v1801_v12 }
 0x501   : > { %v978_v13 = vpop.xlane.xlu0 %977 }
 0x502   : > { %v979_v14 = vsub.f32 %v972_v52, %v978_v13 }
 0x504   : > { %v980_v15 = vmul.f32 1.442695, %v979_v14 }
 0x505   : > { %v1143_v16 = vpop.xlane.xlu0 %1142 }
 0x506   : > { %2511 = vpow2.f32 %v980_v15  ;;  %v1144_v17 = vsub.f32 %v1137_v55, %v1143_v16 }
 0x508   : > { %v1145_v18 = vmul.f32 1.442695, %v1144_v17 }
 0x50a   : > { %2513 = vpow2.f32 %v1145_v18  ;;  %v350_v18 = vld [vmem:[#allocation10] sm:$0xff] }
 0x50b   : > { %v812_v19 = vpop.xlane.xlu1 %811 }
 0x50c   : > { %v813_v45 = vsub.f32 %v3203_v62, %v812_v19  ;;  %v351_v19 = vld [vmem:[#allocation10 + $0x8] sm:$0xff] }
 0x50d   : > { %v1473_v20 = vpop.xlane.xlu0 %1472 }
 0x50e   : > { %v1474_v21 = vsub.f32 %v1467_v3, %v1473_v20  ;;  %v814_v46 = vmul.f32 1.442695, %v813_v45 }
 0x50f   : > { %v1308_v22 = vpop.xlane.xlu1 %1307 }
 0x510   : > { %v3211_v23 = vpop.eup %2511  ;;  %v1475_v24 = vmul.f32 1.442695, %v1474_v21  ;;  %v1309_v25 = vsub.f32 %v1302_v60, %v1308_v22  ;;  %v2386_v21 = vpack.c.bf16 %v351_v19, %v350_v18 }
 0x511   : > { %v982_v26 = vsel %vm647_vm3, %v3211_v23, 0.0 }
 0x512   : > { %2515 = vpow2.f32 %v1475_v24  ;;  %v1310_v27 = vmul.f32 1.442695, %v1309_v25  ;;  %983 = vadd.xlane.f32.xlu0 %v982_v26  ;;  %2387 = vmatpush3.bf16.msra.mxu0 %v2386_v21 }
 0x513   : > { %v1638_v28 = vpop.xlane.xlu1 %1637  ;;  %2388 = vmatprep.subr.bf16.mxu0 %v2797_v0 }
 0x514   : > { %v3215_v29 = vpop.eup %2513  ;;  %2517 = vpow2.f32 %v1310_v27  ;;  %v1639_v30 = vsub.f32 %v1632_v7, %v1638_v28 }
 0x515   : > { %v1803_v31 = vpop.xlane.xlu0 %1802  ;;  %v1147_v32 = vsel %vm647_vm3, %v3215_v29, 0.0 }
 0x516   : > { %v1640_v34 = vmul.f32 1.442695, %v1639_v30  ;;  %v1804_v35 = vsub.f32 %v1797_v10, %v1803_v31  ;;  %1148 = vadd.xlane.f32.xlu1 %v1147_v32 }
 0x518   : > { %2519 = vpow2.f32 %v1640_v34  ;;  %v1805_v36 = vmul.f32 1.442695, %v1804_v35 }
 0x51a   : > { %2521 = vpow2.f32 %v1805_v36 }
 0x51b   : > { %2523 = vpow2.f32 %v814_v46 }
 0x51c   : > { %v3219_v37 = vpop.eup %2515 }
 0x51d   : > { %v1477_v38 = vsel %vm647_vm3, %v3219_v37, 0.0 }
 0x51e   : > { %v2518_v39 = vpop.eup %2517  ;;  %1478 = vadd.xlane.f32.xlu1 %v1477_v38 }
 0x51f   : > { %v1312_v40 = vsel %vm647_vm3, %v2518_v39, 0.0 }
 0x520   : > { %1313 = vadd.xlane.f32.xlu0 %v1312_v40 }
 0x522   : > { %v3224_v41 = vpop.eup %2519 }
 0x523   : > { %v1642_v42 = vsel %vm647_vm3, %v3224_v41, 0.0 }
 0x524   : > { %v3228_v43 = vpop.eup %2521  ;;  %1643 = vadd.xlane.f32.xlu0 %v1642_v42 }
 0x525   : > { %v1807_v44 = vsel %vm647_vm3, %v3228_v43, 0.0  ;;  %v2524_v47 = vpop.eup %2523 }
 0x526   : > { %1808 = vadd.xlane.f32.xlu1 %v1807_v44  ;;  %v816_v48 = vsel %vm647_vm3, %v2524_v47, 0.0 }
 0x537   : > { %987 = vrot.lane.b32.xlu1 %v3153_v33, %s2801_s16  ;;  %s2188_s16 = sshll.u32 %s2871_s27, 7 }
 0x53a   : > { %822 = vrot.lane.b32.xlu0 %v3153_v33, %s2800_s28  ;;  %s2813_s28 = smov 28  }
 0x53e   : > { %1317 = vrot.lane.b32.xlu0 %v3153_v33, %s2803_s19 }
 0x542   : > { %1647 = vrot.lane.b32.xlu0 %v3153_v33, %s2805_s17 }
 0x55b   : > { %817 = vadd.xlane.f32.xlu1 %v816_v48 }
 0x56c   : > { %1152 = vrot.lane.b32.xlu1 %v3153_v33, %s2802_s12  ;;  %s337_s12 = scalar_lea.vmem [#allocation13], %s2151_s9  ;;  %s2814_s9 = smov [#allocation13]  }
 0x56d   : > { %s2022_s19 = sshll.u32 %s337_s12, 4  ;;  %s3291_s19 = int_to_ptr.vmem [resolvable:$true] %s2022_s19 }
 0x56e   : > { %s2709_s27 = scalar_lea.vmem %s3291_s19, 128 }
 0x56f   : > { %p2710_p7 = scmp.ne.s32.totalorder %s3291_s19, %s2709_s27 }
 0x570   : > { %1482 = vrot.lane.b32.xlu1 %v3153_v33, %s2804_s20 }
 0x571   : > { %p2711_p12 = pnand %p2710_p7, %p3359_p4 }
 0x573   : > { %p2712_p1 = pneg %p2711_p12 }
 0x574   : > { %1812 = vrot.lane.b32.xlu1 %v3153_v33, %s2806_s10  ;;  %s3289_s10 = scalar_lea.hbm %s3340_s6, %s2188_s16 }
 0x59f   : > { %v984_v49 = vpop.xlane.xlu0 %983 }
 0x5a3   : > { %v1149_v53 = vpop.xlane.xlu1 %1148 }
 0x5ab   : > { %v1479_v54 = vpop.xlane.xlu1 %1478 }
 0x5ad   : > { %v1314_v50 = vpop.xlane.xlu0 %1313 }
 0x5b1   : > { %v1644_v51 = vpop.xlane.xlu0 %1643 }
 0x5b3   : > { %v1809_v55 = vpop.xlane.xlu1 %1808 }
 0x5b5   : > { %v823_v52 = vpop.permute.xlu0 %822 }
 0x5b6   : > { %2292 = vmatpush3.msra.mxu1 %v823_v52 }
 0x5b7   : > { %2301 = vmatprep.subr.mxu1 %v2799_v1  ;;  %v988_v56 = vpop.permute.xlu1 %987 }
 0x5b9   : > { %v1318_v4 = vpop.permute.xlu0 %1317 }
 0x5bd   : > { %v1648_v10 = vpop.permute.xlu0 %1647 }
 0x5e8   : > { %v818_v57 = vpop.xlane.xlu1 %817 }
 0x5e9   : > { %2525 = vrcp.f32 %v818_v57 }
 0x5ea   : > { %2527 = vrcp.f32 %v984_v49 }
 0x5eb   : > { %2529 = vrcp.f32 %v1149_v53 }
 0x5ec   : > { %2531 = vrcp.f32 %v1314_v50  ;;  %v1153_v63 = vpop.permute.xlu1 %1152 }
 0x5ed   : > { %2533 = vrcp.f32 %v1479_v54 }
 0x5ee   : > { %2535 = vrcp.f32 %v1644_v51 }
 0x5ef   : > { %2537 = vrcp.f32 %v1809_v55 }
 0x5f0   : > { %v1483_v7 = vpop.permute.xlu1 %1482 }
 0x5f3   : > { %v2526_v59 = vpop.eup %2525 }
 0x5f4   : > { %v820_v60 = vmul.f32 %v2526_v59, %v2524_v47  ;;  %v2528_v61 = vpop.eup %2527  ;;  %v1813_v13 = vpop.permute.xlu1 %1812 }
 0x5f5   : > { %v986_v33 = vmul.f32 %v2528_v61, %v3211_v23  ;;  %v2530_v62 = vpop.eup %2529  ;;  %v353_v23 = vld [vmem:[#allocation10 + $0x18] sm:$0xff] }
 0x5f6   : > { %2294 = vmatmul.mubr.msk.f32.vlgmr.msra.gmra.mrb[8].mxu1 %vm647_vm3, %v820_v60  ;;  %v1151_v2 = vmul.f32 %v2530_v62, %v3215_v29  ;;  %v2532_v3 = vpop.eup %2531 }
 0x5f7   : > { %2302 = vmatpush3.msra.mxu1 %v988_v56  ;;  %2303 = vmatprep.mubr.msk.f32.mxu1 %vm2798_vm0, %v2799_v1  ;;  %v1316_v5 = vmul.f32 %v2532_v3, %v2518_v39  ;;  %v2534_v6 = vpop.eup %2533 }
 0x5f8   : > { %2311 = vmatprep.subr.mxu1 %v2799_v1  ;;  %v1481_v8 = vmul.f32 %v2534_v6, %v3219_v37  ;;  %v2536_v9 = vpop.eup %2535 }
 0x5f9   : > { %v1646_v11 = vmul.f32 %v2536_v9, %v3224_v41  ;;  %v2538_v12 = vpop.eup %2537 }
 0x5fa   : > { %2304 = vmatmul.mubr.msk.f32.vlgmr.msra.gmra.mrb[10].mxu1 %vm647_vm3, %v986_v33  ;;  %v1811_v14 = vmul.f32 %v2538_v12, %v3228_v43 }
 0x5fb   : > { %2312 = vmatpush3.msra.mxu1 %v1153_v63  ;;  %2313 = vmatprep.mubr.msk.f32.mxu1 %vm2798_vm0, %v2799_v1 }
 0x5fc   : > { %2321 = vmatprep.subr.mxu1 %v2799_v1 }
 0x5fe   : > { %2314 = vmatmul.mubr.msk.f32.vlgmr.msra.gmra.mrb[12].mxu1 %vm647_vm3, %v1151_v2 }
 0x5ff   : > { %2322 = vmatpush3.msra.mxu1 %v1318_v4  ;;  %2323 = vmatprep.mubr.msk.f32.mxu1 %vm2798_vm0, %v2799_v1 }
 0x600   : > { %2331 = vmatprep.subr.mxu1 %v2799_v1 }
 0x602   : > { %2324 = vmatmul.mubr.msk.f32.vlgmr.msra.gmra.mrb[14].mxu1 %vm647_vm3, %v1316_v5 }
 0x603   : > { %2332 = vmatpush3.msra.mxu1 %v1483_v7  ;;  %2333 = vmatprep.mubr.msk.f32.mxu1 %vm2798_vm0, %v2799_v1 }
 0x604   : > { %2341 = vmatprep.subr.mxu1 %v2799_v1 }
 0x606   : > { %2334 = vmatmul.mubr.msk.f32.vlgmr.msra.gmra.mrb[16].mxu1 %vm647_vm3, %v1481_v8 }
 0x607   : > { %2342 = vmatpush3.msra.mxu1 %v1648_v10  ;;  %2343 = vmatprep.mubr.msk.f32.mxu1 %vm2798_vm0, %v2799_v1 }
 0x608   : > { %2351 = vmatprep.subr.mxu1 %v2799_v1 }
 0x60a   : > { %2344 = vmatmul.mubr.msk.f32.vlgmr.msra.gmra.mrb[18].mxu1 %vm647_vm3, %v1646_v11 }
 0x60b   : > { %2352 = vmatpush3.msra.mxu1 %v1813_v13  ;;  %2353 = vmatprep.mubr.msk.f32.mxu1 %vm2798_vm0, %v2799_v1  ;;  %v352_v1 = vld [vmem:[#allocation10 + $0x10] sm:$0xff] }
 0x60c   : > { %v2389_v25 = vpack.c.bf16 %v353_v23, %v352_v1 }
 0x60e   : > { %2354 = vmatmul.mubr.msk.f32.vlgmr.msra.gmra.mrb[20].mxu1 %vm647_vm3, %v1811_v14  ;;  %2390 = vmatpush3.bf16.msra.mxu0 %v2389_v25 }
 0x6c9   : > { %v894_v15 = vpop.f32.mrb[8].mxu1 }
 0x6ca   : > { %1889 = vrot.lane.b32.xlu0 %v894_v15, %s2807_s26  ;;  %v2295_v16 = vpop.f32.mrb[9].mxu1  ;;  %s2009_s26 = scalar_lea.sflag [#allocation4], %s3090_s15 }
 0x6cd   : > { %v1059_v17 = vpop.f32.mrb[10].mxu1 }
 0x6ce   : > { %1893 = vrot.lane.b32.xlu1 %v1059_v17, %s2808_s11  ;;  %v2305_v20 = vpop.f32.mrb[11].mxu1  ;;  %s2713_s11 = sshll.u32 %s2814_s9, 4  ;;  %s2714_s11 = int_to_ptr.vmem [resolvable:$false] %s2713_s11 }
 0x6cf   : > { %p2716_p13 = scmp.lt.s32.totalorder %s3291_s19, %s2714_s11 }
 0x6d1   : > { %v1224_v22 = vpop.f32.mrb[12].mxu1 }
 0x6d2   : > { %1897 = vrot.lane.b32.xlu0 %v1224_v22, %s2809_s13  ;;  %v2315_v24 = vpop.f32.mrb[13].mxu1  ;;  %s2715_s13 = scalar_lea.vmem %s2714_s11, 256 }
 0x6d3   : > { %p2717_p0 = scmp.lt.s32.totalorder %s2715_s13, %s2709_s27 }
 0x6d5   : > { %v1389_v26 = vpop.f32.mrb[14].mxu1  ;;  %p2718_p2 = por %p2717_p0, %p2716_p13 }
 0x6d6   : > { %1901 = vrot.lane.b32.xlu1 %v1389_v26, %s2810_s30  ;;  %v2325_v27 = vpop.f32.mrb[15].mxu1 }
 0x6d7   : > { %p2719_p3 = pnand %p2718_p2, %p2712_p1 }
 0x6d9   : > { %v1554_v28 = vpop.f32.mrb[16].mxu1 }
 0x6da   : > { %1905 = vrot.lane.b32.xlu0 %v1554_v28, %s2811_s29  ;;  %v2335_v29 = vpop.f32.mrb[17].mxu1 }
 0x6dd   : > { %v1719_v30 = vpop.f32.mrb[18].mxu1 }
 0x6de   : > { %1909 = vrot.lane.b32.xlu1 %v1719_v30, %s2812_s8  ;;  %v2345_v31 = vpop.f32.mrb[19].mxu1 }
 0x6e1   : > { %v1884_v0 = vpop.f32.mrb[20].mxu1 }
 0x6e2   : > { %1913 = vrot.lane.b32.xlu0 %v1884_v0, %s2813_s28  ;;  %v2355_v32 = vpop.f32.mrb[21].mxu1 }
 0x73c   : > { %v1890_v34 = vpop.permute.xlu0 %1889 }
 0x73d   : > { %v1916_v38 = vsel %vm570_vm2, %v3201_v58, %v1890_v34  ;;  %v2185_v58 = vld [vmem:[#allocation11] ss:$0 sm:$0xff] }
 0x740   : > { %v1894_v35 = vpop.permute.xlu1 %1893 }
 0x741   : > { %v1917_v39 = vsel %vm647_vm3, %v1916_v38, %v1894_v35 }
 0x744   : > { %v1898_v36 = vpop.permute.xlu0 %1897 }
 0x745   : > { %v1919_v41 = vsel %vm1918_vm4, %v1917_v39, %v1898_v36 }
 0x748   : > { %v1902_v37 = vpop.permute.xlu1 %1901 }
 0x749   : > { %v1921_v43 = vsel %vm1920_vm5, %v1919_v41, %v1902_v37 }
 0x74c   : > { %v1906_v40 = vpop.permute.xlu0 %1905 }
 0x74d   : > { %v1923_v44 = vsel %vm1922_vm6, %v1921_v43, %v1906_v40 }
 0x750   : > { %v1910_v42 = vpop.permute.xlu1 %1909 }
 0x751   : > { %v1925_v45 = vsel %vm1924_vm7, %v1923_v44, %v1910_v42 }
 0x754   : > { %v1914_v46 = vpop.permute.xlu0 %1913 }
 0x755   : > { %v1927_v47 = vsel %vm1926_vm8, %v1925_v45, %v1914_v46 }
 0x756   : > { %2365 = vmatmul.mubr.msk.f32.vlgmr.msra.gmra.mrb[16].mxu0 %vm356_vm1, %v1927_v47 }
 0x829   : > { %v2003_v48 = vpop.f32.mrb[16].mxu0 }
 0x82a   : > { %v2004_v49 = vadd.f32 %v2185_v58, %v2003_v48  ;;  %v2366_v50 = vpop.f32.mrb[17].mxu0 }
 0x82c   : > { %2007 = vst.msk [vmem:[%s337_s12] sm:$0xff] %vm356_vm1, %v2004_v49 }
 0x82d   : > { %2722 = shalt.err (!%p2719_p3)
}
 0x82e   : > { %s2723_s15 = scalar_lea.hbm %s3289_s10, 128  ;;  %s2727_s8 = scalar_lea.hbm %s3340_s6, 256 }
 0x82f   : > { %p2724_p6 = scmp.ne.s32.totalorder %s3289_s10, %s2723_s15  ;;  %p2728_p8 = scmp.lt.u32.totalorder %s3289_s10, %s3340_s6 }
 0x830   : > { %p2729_p5 = scmp.lt.u32.totalorder %s2727_s8, %s2723_s15  ;;  %p2731_p7 = scmp.lt.u32.totalorder %s2723_s15, %s3289_s10 }
 0x831   : > { %p2725_p10 = pnand %p2724_p6, %p3359_p4 }
 0x832   : > { %p2730_p9 = por %p2729_p5, %p2728_p8 }
 0x833   : > { %p2726_p11 = pneg %p2725_p10 }
 0x834   : > { %p2732_p12 = por %p2731_p7, %p2730_p9 }
 0x836   : > { %p2733_p1 = pnand %p2732_p12, %p2726_p11 }
 0x838   : > { %2736 = shalt.err (!%p2733_p1)
}
 0x839   : > { %2413 = dma.vmem_to_hbm [thread:$0]  (%p3359_p4), %s3291_s19, 128, %s3289_s10, %s2009_s26  }
 0x83a PF: > { %s2034_s12 = sand.u32 1, %s2775_s21   ;;  %p3360_p13 = scmp.ne.s32.totalorder %s3350_s18, 0 }
 0x83b   : > { %p3361_p0 = scmp.ge.s32.totalorder %s2787_s24, 2  ;;  %s2035_s20 = scalar_lea.sflag [#allocation4], %s2034_s12 }
 0x83d   : > { %p2436_p2 = pnand %p3361_p0, %p3360_p13 }
 0x83f   : > { %2770 = dma.done.wait (!%p2436_p2), %s2035_s20, 128  }
 0x840   : > { %2772 = vsyncadd (!%p2436_p2), %s2035_s20, 4294967168  ;;  %p22_p3 = scmp.ge.s32.totalorder %s3020_s7, 4   ;;  %s3362_s21 = smov %s2779_s22 }
 0x841   : > { %s3363_s22 = smov %s2783_s23  ;;  %s3364_s23 = smov %s3032_s14 }
 0x842   : > { %s3365_s24 = smov %s3020_s7  ;;  %24 = sbr.rel (!%p22_p3) target bundleno = 8 (0x8), region = 109 }
 0x849   :  { %2040 = vsyncpa [#allocation3], 1 }
 0x84a   :  { %2042 = vsyncpa [#allocation3 + $0x1], 1 }
 0x84b   :  { %2043 = vsyncpa [#allocation6], 1 }
 0x84c   :  { %2044 = vsyncpa [#allocation9], 1 }
 0x84d   :  { %2045 = vsyncpa [#allocation12], 1 }
 0x84e   :  { %2046 = vsyncpa [#allocation4], 1 }
 0x84f   :  { %2048 = vsyncpa [#allocation4 + $0x1], 1 }

// kernel: _attention_impl.1
= control target key start
LH: loop header
LB: loop body
LE: loop exit
PB: predicated region body
PF: predicated region fallthrough
CT: control target
= control target key end

     0   :  { %11 = vsyncpa [#allocation3], 0  ;;  %s3334_s0 = inlined_call_operand.hbm [shape: f32[2,8,32], index: 0, kind: input, shape index: {}]   ;;  %s3335_s1 = inlined_call_operand.hbm [shape: f32[32,32], index: 1, kind: input, shape index: {}]   ;;  %s3336_s2 = inlined_call_operand.hbm [shape: f32[32,32], index: 2, kind: input, shape index: {}]   ;;  %s3337_s3 = inlined_call_operand.hbm [shape: f32[32,32], index: 3, kind: input, shape index: {}]   ;;  %s3338_s4 = inlined_call_operand.hbm [shape: f32[32,32], index: 4, kind: input, shape index: {}]   ;;  %s3339_s5 = inlined_call_operand.hbm [shape: f32[1,32], index: 5, kind: input, shape index: {}]   ;;  %s3340_s6 = inlined_call_operand.hbm [shape: f32[2,8,32], index: 6, kind: output, shape index: {}]  }
   0x1   :  { %13 = vsyncpa [#allocation3 + $0x1], 0 }
   0x2   :  { %14 = vsyncpa [#allocation6], 0 }
   0x3   :  { %15 = vsyncpa [#allocation9], 0 }
   0x4   :  { %16 = vsyncpa [#allocation12], 0 }
   0x5   :  { %17 = vsyncpa [#allocation4], 0 }
   0x6   :  { %19 = vsyncpa [#allocation4 + $0x1], 0  ;;  %s2850_s21 = smov 0   ;;  %s2852_s22 = smov 0  }
   0x7   :  { %s2854_s23 = smov 0   ;;  %s2856_s24 = smov 0  }
   0x8 LB: > { %s2789_s25 = smov [#allocation5]   ;;  %s2871_s27 = sadd.s32 4294967295, %s2787_s24   ;;  %s2787_s24 = sphi %s2856_s24, %s3365_s24   ;;  %s2783_s23 = sphi %s2854_s23, %s3364_s23   ;;  %s2779_s22 = sphi %s2852_s22, %s3363_s22   ;;  %s2775_s21 = sphi %s2850_s21, %s3362_s21  }
   0x9   : > { %s199_s26 = sshll.u32 %s2789_s25, 4  ;;  %p2141_p0 = scmp.ge.s32.totalorder %s2787_s24, 1  ;;  %s2876_s26 = int_to_ptr.vmem [resolvable:$true] %s199_s26 }
   0xa   : > { %p3341_p1 = scmp.eq.s32.totalorder %s2871_s27, 0  ;;  %p187_p2 = scmp.lt.s32.totalorder %s2787_s24, 3 }
   0xb   : > { %s2790_s29 = smov [#allocation8]   ;;  %s2791_s8 = smov [#allocation7]  }
   0xc   : > { %p2878_p3 = pnand %p2141_p0, %p187_p2  ;;  %s225_s30 = sshll.u32 %s2790_s29, 4  ;;  %s2891_s30 = int_to_ptr.vmem [resolvable:$true] %s225_s30 }
   0xd   : > { %s212_s9 = sshll.u32 %s2791_s8, 4  ;;  %s2539_s12 = scalar_lea.hbm %s3335_s1, 512  ;;  %s2893_s9 = int_to_ptr.vmem [resolvable:$true] %s212_s9 }
   0xe   : > { %s3344_s28 = scalar_select %p2878_p3, 1, 0 }
   0xf   : > { %p2415_p5 = pneg %p2878_p3  ;;  %p2540_p7 = scmp.ne.s32.totalorder %s3335_s1, %s2539_s12 }
  0x10   : > { %p2546_p11 = scmp.lt.u32.totalorder %s2539_s12, %s3335_s1 }
  0x11   : > { %p2887_p6 = pnand %p2415_p5, %p3341_p1 }
  0x13   : > { %p2903_p8 = pneg %p2887_p6 }
  0x15   : > { %p2542_p9 = pnand %p2903_p8, %p2540_p7 }
  0x17   : > { %p2543_p10 = pneg %p2542_p9 }
  0x19   : > { %p2548_p12 = pnand %p2546_p11, %p2543_p10 }
  0x1b   : > { %2551 = shalt.err (!%p2548_p12)
}
  0x1c   : > { %s2552_s18 = scalar_lea.vmem %s2876_s26, 512  ;;  %p2560_p5 = scmp.lt.s32.totalorder %s2876_s26, %s2876_s26 }
  0x1d   : > { %p2553_p13 = scmp.ne.s32.totalorder %s2876_s26, %s2552_s18  ;;  %p2561_p4 = scmp.lt.s32.totalorder %s2552_s18, %s2552_s18 }
  0x1f   : > { %p2555_p0 = pnand %p2553_p13, %p2903_p8  ;;  %p2562_p7 = por %p2561_p4, %p2560_p5 }
  0x21   : > { %p2556_p2 = pneg %p2555_p0 }
  0x23   : > { %p2563_p9 = pnand %p2562_p7, %p2556_p2 }
  0x25   : > { %2566 = shalt.err (!%p2563_p9)
}
  0x26   : > { %s2792_s19 = smov 128   ;;  %s2793_s20 = smov 8  }
  0x27   : > { %2418 = dma.hbm_to_vmem [thread:$0]  (!%p2887_p6), %s3335_s1, 512, %s2876_s26, [#allocation6], %s2792_s19, %s2792_s19, %s2793_s20  }
  0x28   : > { %s2567_s11 = scalar_lea.hbm %s3337_s3, 512 }
  0x29   : > { %p2568_p4 = scmp.ne.s32.totalorder %s3337_s3, %s2567_s11  ;;  %p2574_p12 = scmp.lt.u32.totalorder %s2567_s11, %s3337_s3 }
  0x2b   : > { %p2570_p10 = pnand %p2568_p4, %p2903_p8 }
  0x2d   : > { %p2571_p11 = pneg %p2570_p10 }
  0x2f   : > { %p2576_p13 = pnand %p2574_p12, %p2571_p11 }
  0x31   : > { %2579 = shalt.err (!%p2576_p13)
}
  0x32   : > { %s2580_s26 = scalar_lea.vmem %s2891_s30, 512  ;;  %p2588_p7 = scmp.lt.s32.totalorder %s2891_s30, %s2891_s30 }
  0x33   : > { %p2581_p0 = scmp.ne.s32.totalorder %s2891_s30, %s2580_s26  ;;  %p2589_p9 = scmp.lt.s32.totalorder %s2580_s26, %s2580_s26 }
  0x35   : > { %p2583_p2 = pnand %p2581_p0, %p2903_p8  ;;  %p2590_p4 = por %p2589_p9, %p2588_p7 }
  0x37   : > { %p2584_p5 = pneg %p2583_p2 }
  0x39   : > { %p2591_p10 = pnand %p2590_p4, %p2584_p5 }
  0x3b   : > { %2594 = shalt.err (!%p2591_p10)
}
  0x3c   : > { %2424 = dma.hbm_to_vmem [thread:$0]  (!%p2887_p6), %s3337_s3, 512, %s2891_s30, [#allocation9], %s2792_s19, %s2792_s19, %s2793_s20  }
  0x3d   : > { %s2595_s8 = scalar_lea.hbm %s3336_s2, 512 }
  0x3e   : > { %p2596_p11 = scmp.ne.s32.totalorder %s3336_s2, %s2595_s8  ;;  %p2602_p0 = scmp.lt.u32.totalorder %s2595_s8, %s3336_s2 }
  0x40   : > { %p2598_p12 = pnand %p2596_p11, %p2903_p8 }
  0x42   : > { %p2599_p13 = pneg %p2598_p12 }
  0x44   : > { %p2604_p2 = pnand %p2602_p0, %p2599_p13 }
  0x46   : > { %2607 = shalt.err (!%p2604_p2)
}
  0x47   : > { %s2608_s30 = scalar_lea.vmem %s2893_s9, 512  ;;  %p2616_p4 = scmp.lt.s32.totalorder %s2893_s9, %s2893_s9 }
  0x48   : > { %p2609_p5 = scmp.ne.s32.totalorder %s2893_s9, %s2608_s30  ;;  %p2617_p10 = scmp.lt.s32.totalorder %s2608_s30, %s2608_s30 }
  0x4a   : > { %p2611_p7 = pnand %p2609_p5, %p2903_p8  ;;  %p2618_p11 = por %p2617_p10, %p2616_p4 }
  0x4c   : > { %p2612_p9 = pneg %p2611_p7 }
  0x4e   : > { %p2619_p12 = pnand %p2618_p11, %p2612_p9 }
  0x50   : > { %2622 = shalt.err (!%p2619_p12)
}
  0x51   : > { %2421 = dma.hbm_to_vmem [thread:$0]  (!%p2887_p6), %s3336_s2, 512, %s2893_s9, [#allocation6], %s2792_s19, %s2792_s19, %s2793_s20  }
  0x52   : > { %s2794_s26 = smov [#allocation10]   ;;  %s2795_s18 = smov [#allocation11]  }
  0x53   : > { %s238_s17 = sshll.u32 %s2794_s26, 4  ;;  %s252_s25 = sshll.u32 %s2795_s18, 4  ;;  %s239_s17 = int_to_ptr.vmem [resolvable:$true] %s238_s17  ;;  %s253_s25 = int_to_ptr.vmem [resolvable:$true] %s252_s25 }
  0x54   : > { %s2623_s10 = scalar_lea.hbm %s3338_s4, 512 }
  0x55   : > { %p2624_p13 = scmp.ne.s32.totalorder %s3338_s4, %s2623_s10  ;;  %p2630_p5 = scmp.lt.u32.totalorder %s2623_s10, %s3338_s4 }
  0x57   : > { %p2626_p0 = pnand %p2624_p13, %p2903_p8 }
  0x59   : > { %p2627_p2 = pneg %p2626_p0 }
  0x5b   : > { %p2632_p7 = pnand %p2630_p5, %p2627_p2 }
  0x5d   : > { %2635 = shalt.err (!%p2632_p7)
}
  0x5e   : > { %s2636_s9 = scalar_lea.vmem %s239_s17, 512  ;;  %p2644_p11 = scmp.lt.s32.totalorder %s239_s17, %s239_s17 }
  0x5f   : > { %p2637_p9 = scmp.ne.s32.totalorder %s239_s17, %s2636_s9  ;;  %p2645_p12 = scmp.lt.s32.totalorder %s2636_s9, %s2636_s9 }
  0x61   : > { %p2639_p4 = pnand %p2637_p9, %p2903_p8  ;;  %p2646_p1 = por %p2645_p12, %p2644_p11 }
  0x63   : > { %p2640_p10 = pneg %p2639_p4 }
  0x65   : > { %p2647_p3 = pnand %p2646_p1, %p2640_p10 }
  0x67   : > { %2650 = shalt.err (!%p2647_p3)
}
  0x68   : > { %2427 = dma.hbm_to_vmem [thread:$0]  (!%p2887_p6), %s3338_s4, 512, %s239_s17, [#allocation9], %s2792_s19, %s2792_s19, %s2793_s20  }
  0x69   : > { %s2651_s29 = scalar_lea.hbm %s3339_s5, 16 }
  0x6a   : > { %p2652_p1 = scmp.ne.s32.totalorder %s3339_s5, %s2651_s29  ;;  %p2658_p0 = scmp.lt.u32.totalorder %s2651_s29, %s3339_s5 }
  0x6c   : > { %p2654_p3 = pnand %p2652_p1, %p2903_p8 }
  0x6e   : > { %p2655_p13 = pneg %p2654_p3 }
  0x70   : > { %p2660_p2 = pnand %p2658_p0, %p2655_p13 }
  0x72   : > { %2663 = shalt.err (!%p2660_p2)
}
  0x73   : > { %s2664_s13 = scalar_lea.vmem %s253_s25, 16  ;;  %s2671_s19 = scalar_lea.vmem %s253_s25, 32 }
  0x74   : > { %p2665_p5 = scmp.ne.s32.totalorder %s253_s25, %s2664_s13  ;;  %p2672_p4 = scmp.lt.s32.totalorder %s253_s25, %s253_s25 }
  0x75   : > { %p2673_p10 = scmp.lt.s32.totalorder %s2671_s19, %s2664_s13 }
  0x76   : > { %p2667_p7 = pnand %p2665_p5, %p2903_p8 }
  0x77   : > { %p2674_p11 = por %p2673_p10, %p2672_p4 }
  0x78   : > { %p2668_p9 = pneg %p2667_p7 }
  0x7a   : > { %p2675_p12 = pnand %p2674_p11, %p2668_p9 }
  0x7c   : > { %2678 = shalt.err (!%p2675_p12)
}
  0x7d   : > { %2430 = dma.hbm_to_vmem [thread:$0]  (!%p2887_p6), %s3339_s5, 16, %s253_s25, [#allocation12]  }
  0x7e   : > { %s2140_s15 = sadd.s32 4294967294, %s2787_s24   ;;  %s3020_s7 = sadd.s32 1, %s2787_s24  }
  0x7f   : > { %s32_s30 = sadd.s32 1, %s2783_s23  ;;  %s29_s9 = ssub.s32 %s2787_s24, %s3020_s7 }
  0x80   : > { %p39_p8 = scmp.ne.s32.totalorder %s2783_s23, %s2779_s22  ;;  %p30_p1 = scmp.eq.s32.totalorder %s29_s9, 0 }
  0x81   : > { %p40_p3 = scmp.eq.s32.totalorder %s2787_s24, 0  ;;  %p45_p13 = scmp.ne.s32.totalorder %s2779_s22, %s2775_s21 }
  0x82   : > { %p174_p0 = scmp.eq.s32.totalorder %s2871_s27, 1  ;;  %p3347_p5 = scmp.eq.s32.totalorder %s2871_s27, 0 }
  0x83   : > { %s3032_s14 = scalar_select %p30_p1, %s2783_s23, %s32_s30  }
  0x84   : > { %p41_p2 = por %p40_p3, %p39_p8  ;;  %p3036_p7 = por %p3347_p5, %p45_p13 }
  0x85   : > { %p3040_p6 = por %p174_p0, %p39_p8  ;;  %p180_p9 = scmp.eq.s32.totalorder %s2140_s15, 1 }
  0x86   : > { %p2444_p4 = scmp.lt.s32.totalorder %s2787_s24, 2  ;;  %s263_s26 = sand.u32 1, %s2783_s23  }
  0x87   : > { %s3349_s25 = scalar_select %p3040_p6, 1, 0 }
  0x88   : > { %p3046_p10 = por %p180_p9, %p45_p13  ;;  %s2148_s29 = sshll.u32 %s263_s26, 3 }
  0x89   : > { %s2149_s8 = sshll.u32 %s2787_s24, 7  ;;  %s267_s13 = scalar_lea.vmem [#allocation2], %s2148_s29 }
  0x8a   : > { %s3350_s18 = scalar_select %p3046_p10, 1, 0 }
  0x8b   : > { %s3054_s12 = scalar_lea.hbm %s3334_s0, %s2149_s8  ;;  %s274_s19 = sshll.u32 %s267_s13, 4  ;;  %s3060_s19 = int_to_ptr.vmem [resolvable:$true] %s274_s19 }
  0x8c   : > { %p3056_p11 = pnand %p2444_p4, %p41_p2  ;;  %s264_s17 = scalar_lea.sflag [#allocation3], %s263_s26 }
  0x8d   : > { %s2679_s15 = scalar_lea.hbm %s3054_s12, 128  ;;  %s2684_s29 = scalar_lea.hbm %s3334_s0, 256 }
  0x8e   : > { %p2680_p12 = scmp.ne.s32.totalorder %s3054_s12, %s2679_s15  ;;  %p2681_p8 = pneg %p3056_p11 }
  0x8f   : > { %p2685_p13 = scmp.lt.u32.totalorder %s3054_s12, %s3334_s0  ;;  %p2686_p0 = scmp.lt.u32.totalorder %s2684_s29, %s2679_s15 }
  0x90   : > { %p2682_p1 = pnand %p2681_p8, %p2680_p12  ;;  %p2688_p5 = scmp.lt.u32.totalorder %s2679_s15, %s3054_s12 }
  0x91   : > { %p2687_p2 = por %p2686_p0, %p2685_p13 }
  0x92   : > { %p2683_p3 = pneg %p2682_p1 }
  0x93   : > { %p2689_p9 = por %p2688_p5, %p2687_p2 }
  0x95   : > { %p2690_p4 = pnand %p2689_p9, %p2683_p3 }
  0x97   : > { %2693 = shalt.err (!%p2690_p4)
}
  0x98   : > { %s2694_s26 = scalar_lea.vmem %s3060_s19, 128  ;;  %s2796_s11 = smov [#allocation2]  }
  0x99   : > { %p2695_p12 = scmp.ne.s32.totalorder %s3060_s19, %s2694_s26  ;;  %s2699_s13 = sshll.u32 %s2796_s11, 4  ;;  %s2700_s13 = int_to_ptr.vmem [resolvable:$false] %s2699_s13 }
  0x9a   : > { %s2701_s30 = scalar_lea.vmem %s2700_s13, 256  ;;  %p2702_p6 = scmp.lt.s32.totalorder %s3060_s19, %s2700_s13 }
  0x9b   : > { %p2697_p1 = pnand %p2695_p12, %p2681_p8  ;;  %p2703_p13 = scmp.lt.s32.totalorder %s2701_s30, %s2694_s26 }
  0x9d   : > { %p2698_p10 = pneg %p2697_p1  ;;  %p2704_p0 = por %p2703_p13, %p2702_p6 }
  0x9f   : > { %p2705_p2 = pnand %p2704_p0, %p2698_p10 }
  0xa1   : > { %2708 = shalt.err (!%p2705_p2)
}
  0xa2   : > { %2434 = dma.hbm_to_vmem [thread:$0]  (!%p3056_p11), %s3054_s12, 128, %s3060_s19, %s264_s17  }
  0xa3   : > { %p3352_p3 = scmp.ne.s32.totalorder %s3344_s28, 0 }
  0xa4   : > { %s3090_s15 = sand.u32 (!%p3352_p3), 1, %s2779_s22  }
  0xa5   : > { %283 = sbr.rel (%p3352_p3) target bundleno = 2106 (0x83a), region = 44  ;;  %s2151_s9 = sshll.u32 (!%p3352_p3), %s3090_s15, 3 }
  0xa6   : > { %s286_s29 = scalar_lea.sflag (!%p3352_p3), [#allocation3], %s3090_s15  ;;  %s3096_s8 = scalar_lea.vmem (!%p3352_p3), [#allocation2], %s2151_s9 }
  0xac   : > { %2754 = dma.done.wait (%p3036_p7), %s286_s29, 128  }
  0xad   : > { %2756 = vsyncadd (%p3036_p7), %s286_s29, 4294967168  ;;  %p3353_p6 = scmp.eq.s32.totalorder %s2871_s27, 0 }
  0xaf   : > { %2758 = dma.done.wait (%p3353_p6), [#allocation6], 1024   ;;  %p3354_p10 = pmov %p3353_p6 }
  0xb0   : > { %p3355_p11 = pmov %p3353_p6 }
  0xb1   : > { %2760 = vsyncadd (%p3354_p10), [#allocation6], 4294966272 }
  0xb2   : > { %2762 = dma.done.wait (%p3355_p11), [#allocation9], 1024   ;;  %p3356_p8 = pmov %p3353_p6 }
  0xb3   : > { %p3357_p5 = pmov %p3353_p6 }
  0xb4   : > { %2764 = vsyncadd (%p3356_p8), [#allocation9], 4294966272 }
  0xb5   : > { %2766 = dma.done.wait (%p3357_p5), [#allocation12], 16   ;;  %p3358_p9 = pmov %p3357_p5 }
  0xb6   : > { %v2797_v0 = vmov 0.0|0.0   ;;  %vm2798_vm0 = vmmov 0   ;;  %v2799_v1 = vmov 0.0   ;;  %v342_v2 = vld [vmem:[#allocation7] sm:$0xff]  ;;  %v343_v3 = vld [vmem:[#allocation7 + $0x8] sm:$0xff]  ;;  %v344_v7 = vld [vmem:[#allocation7 + $0x10] sm:$0xff] }
  0xb7   : > { %2768 = vsyncadd (%p3358_p9), [#allocation12], 4294967280  ;;  %2373 = vmatprep.subr.bf16.mxu1 %v2797_v0  ;;  %2367 = vmatprep.subr.bf16.mxu0 %v2797_v0  ;;  %v338_v4 = vld [vmem:[#allocation5] sm:$0xff]  ;;  %v2374_v5 = vpack.c.bf16 %v343_v3, %v342_v2  ;;  %v339_v6 = vld [vmem:[#allocation5 + $0x8] sm:$0xff]  ;;  %vm356_vm1 = vcmask 261120   ;;  %vm570_vm2 = vcmask 31744  }
  0xb8   : > { %2262 = vmatprep.mubr.msk.f32.mxu1 %vm2798_vm0, %v2799_v1  ;;  %2251 = vmatprep.mubr.msk.f32.mxu0 %vm2798_vm0, %v2799_v1  ;;  %v345_v8 = vld [vmem:[#allocation7 + $0x18] sm:$0xff]  ;;  %v2368_v9 = vpack.c.bf16 %v339_v6, %v338_v4  ;;  %v340_v10 = vld [vmem:[#allocation5 + $0x10] sm:$0xff]  ;;  %s2800_s28 = smov 124   ;;  %s2801_s16 = smov 120   ;;  %v346_v19 = vld [vmem:[#allocation8] sm:$0xff]  ;;  %vm647_vm3 = vcmask 64512  }
  0xb9   : > { %v341_v11 = vld [vmem:[#allocation5 + $0x18] sm:$0xff]  ;;  %2375 = vmatpush3.bf16.msra.mxu1 %v2374_v5  ;;  %v2377_v12 = vpack.c.bf16 %v345_v8, %v344_v7  ;;  %s2802_s12 = smov 116   ;;  %s2803_s19 = smov 112   ;;  %v347_v20 = vld [vmem:[#allocation8 + $0x8] sm:$0xff]  ;;  %v348_v21 = vld [vmem:[#allocation8 + $0x10] sm:$0xff]  ;;  %vm1918_vm4 = vcmask 97280  }
  0xba   : > { %2369 = vmatpush3.bf16.msra.mxu0 %v2368_v9  ;;  %2376 = vmatprep.subr.bf16.mxu1 %v2797_v0  ;;  %v2371_v13 = vpack.c.bf16 %v341_v11, %v340_v10  ;;  %v355_v14 = vld [vmem:[%s3096_s8] sm:$0xff]  ;;  %s2804_s20 = smov 108   ;;  %s2805_s17 = smov 104   ;;  %v2380_v22 = vpack.c.bf16 %v347_v20, %v346_v19  ;;  %vm1920_vm5 = vcmask 130048   ;;  %vm1922_vm6 = vcmask 162816  }
  0xbb   : > { %2370 = vmatprep.subr.bf16.mxu0 %v2797_v0  ;;  %s2806_s10 = smov 100   ;;  %v349_v23 = vld [vmem:[#allocation8 + $0x18] sm:$0xff]  ;;  %s2807_s26 = smov 4   ;;  %vm1924_vm7 = vcmask 195584   ;;  %vm1926_vm8 = vcmask 228352  }
  0xbc   : > { %v2383_v24 = vpack.c.bf16 %v349_v23, %v348_v21  ;;  %s2808_s11 = smov 8   ;;  %s2809_s13 = smov 12  }
  0xbd   : > { %2378 = vmatpush3.bf16.msra.mxu1 %v2377_v12  ;;  %s2810_s30 = smov 16   ;;  %s2811_s29 = smov 20  }
  0xbe   : > { %2372 = vmatpush3.bf16.msra.mxu0 %v2371_v13  ;;  %2276 = vmatprep.subr.mxu1 %v2799_v1  ;;  %s2812_s8 = smov 24   ;;  %p3359_p4 = scmp.ne.s32.totalorder %s3349_s25, 0 }
  0xbf   : > { %2379 = vmatprep.subr.bf16.mxu0 %v2797_v0 }
  0xc0   : > { %2263 = vmatmul.mubr.msk.f32.vlgmr.msra.gmra.mrb[0].mxu1 %vm356_vm1, %v355_v14 }
  0xc1   : > { %2252 = vmatmul.mubr.msk.f32.vlgmr.msra.gmra.mrb[0].mxu0 %vm356_vm1, %v355_v14  ;;  %2278 = vmatprep.mubr.msk.f32.mxu1 %vm2798_vm0, %v2799_v1 }
  0xc2   : > { %2273 = vmatprep.mubr.msk.f32.mxu0 %vm2798_vm0, %v2799_v1  ;;  %2381 = vmatpush3.bf16.msra.mxu0 %v2380_v22 }
  0xc3   : > { %2382 = vmatprep.subr.bf16.mxu0 %v2797_v0 }
  0xc6   : > { %2384 = vmatpush3.bf16.msra.mxu0 %v2383_v24 }
  0xc7   : > { %2296 = vmatprep.subr.mxu0 %v2799_v1 }
  0xc9   : > { %2274 = vmatmul.mubr.msk.f32.vlgmr.msra.gmra.mrb[2].mxu0 %vm356_vm1, %v355_v14 }
  0xca   : > { %2298 = vmatprep.mubr.msk.f32.mxu0 %vm2798_vm0, %v2799_v1 }
 0x193   : > { %v496_v15 = vpop.f32.mrb[0].mxu1 }
 0x194   : > { %734 = vrot.lane.b32.xlu1 %v496_v15, %s2800_s28  ;;  %v2264_v16 = vpop.f32.mrb[1].mxu1  ;;  %2277 = vmatpush3.xpose.msk.msra.mxu1 %vm570_vm2, %v496_v15  ;;  %v426_v17 = vpop.f32.mrb[0].mxu0 }
 0x195   : > { %v2253_v18 = vpop.f32.mrb[1].mxu0  ;;  %2281 = vmatprep.subr.mxu1 %v2799_v1 }
 0x197   : > { %2279 = vmatmul.mubr.msk.f32.vlgmr.msra.gmra.mrb[2].mxu1 %vm570_vm2, %v426_v17 }
 0x198   : > { %732 = vrot.lane.b32.xlu1 %v426_v17, %s2800_s28  ;;  %2283 = vmatprep.mubr.msk.f32.mxu1 %vm2798_vm0, %v2799_v1 }
 0x19c   : > { %898 = vrot.lane.b32.xlu1 %v426_v17, %s2801_s16  ;;  %v3153_v33 = vpop.f32.mrb[2].mxu0 }
 0x19d   : > { %2282 = vmatpush3.msra.mxu1 %v3153_v33  ;;  %v2275_v34 = vpop.f32.mrb[3].mxu0 }
 0x19e   : > { %2286 = vmatprep.subr.mxu1 %v2799_v1 }
 0x1a0   : > { %1065 = vrot.lane.b32.xlu1 %v496_v15, %s2802_s12 }
 0x1a4   : > { %1063 = vrot.lane.b32.xlu1 %v426_v17, %s2802_s12 }
 0x1a8   : > { %1230 = vrot.lane.b32.xlu1 %v496_v15, %s2803_s19 }
 0x1ac   : > { %1228 = vrot.lane.b32.xlu1 %v426_v17, %s2803_s19 }
 0x1b0   : > { %1395 = vrot.lane.b32.xlu1 %v496_v15, %s2804_s20 }
 0x1b4   : > { %1560 = vrot.lane.b32.xlu1 %v496_v15, %s2805_s17 }
 0x1b8   : > { %1725 = vrot.lane.b32.xlu1 %v496_v15, %s2806_s10 }
 0x206   : > { %v735_v35 = vpop.permute.xlu1 %734 }
 0x20a   : > { %v733_v36 = vpop.permute.xlu1 %732 }
 0x20e   : > { %v899_v37 = vpop.permute.xlu1 %898 }
 0x212   : > { %v1066_v38 = vpop.permute.xlu1 %1065 }
 0x216   : > { %v1064_v39 = vpop.permute.xlu1 %1063 }
 0x21a   : > { %v1231_v40 = vpop.permute.xlu1 %1230 }
 0x21e   : > { %v1229_v43 = vpop.permute.xlu1 %1228 }
 0x222   : > { %v1396_v45 = vpop.permute.xlu1 %1395 }
 0x226   : > { %v1561_v48 = vpop.permute.xlu1 %1560 }
 0x22a   : > { %v1726_v50 = vpop.permute.xlu1 %1725 }
 0x26a   : > { %v643_v25 = vpop.f32.mrb[2].mxu1 }
 0x26b   : > { %v2280_v26 = vpop.f32.mrb[3].mxu1  ;;  %v648_v27 = vsel %vm647_vm3, %v643_v25, -inf }
 0x26c   : > { %649 = vmax.xlane.f32.xlu0 %v648_v27 }
 0x2f9   : > { %v650_v28 = vpop.xlane.xlu0 %649 }
 0x2fa   : > { %v651_v29 = vsub.f32 %v643_v25, %v650_v28 }
 0x2fc   : > { %v652_v30 = vmul.f32 1.442695, %v651_v29 }
 0x2fe   : > { %2507 = vpow2.f32 %v652_v30 }
 0x308   : > { %v2508_v31 = vpop.eup %2507 }
 0x309   : > { %v654_v32 = vsel %vm647_vm3, %v2508_v31, 0.0 }
 0x30a   : > { %655 = vadd.xlane.f32.xlu0 %v654_v32 }
 0x320   : > { %900 = vrot.lane.b32.xlu0 %v496_v15, %s2801_s16 }
 0x324   : > { %1393 = vrot.lane.b32.xlu0 %v426_v17, %s2804_s20 }
 0x328   : > { %1558 = vrot.lane.b32.xlu0 %v426_v17, %s2805_s17 }
 0x32c   : > { %1723 = vrot.lane.b32.xlu0 %v426_v17, %s2806_s10 }
 0x397   : > { %v656_v41 = vpop.xlane.xlu0 %655 }
 0x398   : > { %2509 = vrcp.f32 %v656_v41 }
 0x39b   : > { %v901_v42 = vpop.permute.xlu0 %900 }
 0x39c   : > { %2297 = vmatpush3.xpose.msk.msra.mxu0 %vm570_vm2, %v901_v42 }
 0x39d   : > { %2306 = vmatprep.subr.mxu0 %v2799_v1 }
 0x39f   : > { %2299 = vmatmul.mubr.msk.f32.vlgmr.msra.gmra.mrb[4].mxu0 %vm570_vm2, %v899_v37  ;;  %v1394_v47 = vpop.permute.xlu0 %1393 }
 0x3a0   : > { %2307 = vmatpush3.xpose.msk.msra.mxu0 %vm570_vm2, %v1066_v38  ;;  %2308 = vmatprep.mubr.msk.f32.mxu0 %vm2798_vm0, %v2799_v1 }
 0x3a1   : > { %2316 = vmatprep.subr.mxu0 %v2799_v1 }
 0x3a2   : > { %v2510_v44 = vpop.eup %2509 }
 0x3a3   : > { %v658_v46 = vmul.f32 %v2510_v44, %v2508_v31  ;;  %2309 = vmatmul.mubr.msk.f32.vlgmr.msra.gmra.mrb[6].mxu0 %vm570_vm2, %v1064_v39  ;;  %v1559_v49 = vpop.permute.xlu0 %1558 }
 0x3a4   : > { %2317 = vmatpush3.xpose.msk.msra.mxu0 %vm570_vm2, %v1231_v40  ;;  %2318 = vmatprep.mubr.msk.f32.mxu0 %vm2798_vm0, %v2799_v1 }
 0x3a5   : > { %2284 = vmatmul.mubr.msk.f32.vlgmr.msra.gmra.mrb[4].mxu1 %vm647_vm3, %v658_v46  ;;  %2326 = vmatprep.subr.mxu0 %v2799_v1 }
 0x3a6   : > { %2287 = vmatpush3.xpose.msk.msra.mxu1 %vm570_vm2, %v735_v35  ;;  %2288 = vmatprep.mubr.msk.f32.mxu1 %vm2798_vm0, %v2799_v1 }
 0x3a7   : > { %2319 = vmatmul.mubr.msk.f32.vlgmr.msra.gmra.mrb[8].mxu0 %vm570_vm2, %v1229_v43  ;;  %2291 = vmatprep.subr.mxu1 %v2799_v1  ;;  %v1724_v51 = vpop.permute.xlu0 %1723 }
 0x3a8   : > { %2327 = vmatpush3.xpose.msk.msra.mxu0 %vm570_vm2, %v1396_v45  ;;  %2328 = vmatprep.mubr.msk.f32.mxu0 %vm2798_vm0, %v2799_v1 }
 0x3a9   : > { %2289 = vmatmul.mubr.msk.f32.vlgmr.msra.gmra.mrb[6].mxu1 %vm570_vm2, %v733_v36  ;;  %2336 = vmatprep.subr.mxu0 %v2799_v1 }
 0x3aa   : > { %2293 = vmatprep.mubr.msk.f32.mxu1 %vm2798_vm0, %v2799_v1 }
 0x3ab   : > { %2329 = vmatmul.mubr.msk.f32.vlgmr.msra.gmra.mrb[10].mxu0 %vm570_vm2, %v1394_v47 }
 0x3ac   : > { %2337 = vmatpush3.xpose.msk.msra.mxu0 %vm570_vm2, %v1561_v48  ;;  %2338 = vmatprep.mubr.msk.f32.mxu0 %vm2798_vm0, %v2799_v1 }
 0x3ad   : > { %2346 = vmatprep.subr.mxu0 %v2799_v1 }
 0x3af   : > { %2339 = vmatmul.mubr.msk.f32.vlgmr.msra.gmra.mrb[12].mxu0 %vm570_vm2, %v1559_v49 }
 0x3b0   : > { %2347 = vmatpush3.xpose.msk.msra.mxu0 %vm570_vm2, %v1726_v50  ;;  %2348 = vmatprep.mubr.msk.f32.mxu0 %vm2798_vm0, %v2799_v1 }
 0x3b1   : > { %2385 = vmatprep.subr.bf16.mxu0 %v2797_v0 }
 0x3b3   : > { %2349 = vmatmul.mubr.msk.f32.vlgmr.msra.gmra.mrb[14].mxu0 %vm570_vm2, %v1724_v51 }
 0x3b4   : > { %2364 = vmatprep.mubr.msk.f32.mxu0 %vm2798_vm0, %v2799_v1 }
 0x472   : > { %v972_v52 = vpop.f32.mrb[4].mxu0 }
 0x473   : > { %v2300_v53 = vpop.f32.mrb[5].mxu0  ;;  %v976_v54 = vsel %vm647_vm3, %v972_v52, -inf }
 0x474   : > { %977 = vmax.xlane.f32.xlu0 %v976_v54 }
 0x476   : > { %v1137_v55 = vpop.f32.mrb[6].mxu0 }
 0x477   : > { %v2310_v56 = vpop.f32.mrb[7].mxu0  ;;  %v1141_v57 = vsel %vm647_vm3, %v1137_v55, -inf }
 0x478   : > { %v3201_v58 = vpop.f32.mrb[4].mxu1  ;;  %1142 = vmax.xlane.f32.xlu0 %v1141_v57 }
 0x479   : > { %v2285_v59 = vpop.f32.mrb[5].mxu1 }
 0x47a   : > { %v1302_v60 = vpop.f32.mrb[8].mxu0 }
 0x47b   : > { %v2320_v61 = vpop.f32.mrb[9].mxu0  ;;  %v1306_v6 = vsel %vm647_vm3, %v1302_v60, -inf }
 0x47c   : > { %v3203_v62 = vpop.f32.mrb[6].mxu1 }
 0x47d   : > { %v2290_v63 = vpop.f32.mrb[7].mxu1  ;;  %v810_v2 = vsel %vm647_vm3, %v3203_v62, -inf }
 0x47e   : > { %811 = vmax.xlane.f32.xlu1 %v810_v2  ;;  %v1467_v3 = vpop.f32.mrb[10].mxu0 }
 0x47f   : > { %v2330_v4 = vpop.f32.mrb[11].mxu0  ;;  %v1471_v5 = vsel %vm647_vm3, %v1467_v3, -inf }
 0x480   : > { %1472 = vmax.xlane.f32.xlu0 %v1471_v5 }
 0x482   : > { %1307 = vmax.xlane.f32.xlu1 %v1306_v6  ;;  %v1632_v7 = vpop.f32.mrb[12].mxu0 }
 0x483   : > { %v2340_v8 = vpop.f32.mrb[13].mxu0  ;;  %v1636_v9 = vsel %vm647_vm3, %v1632_v7, -inf }
 0x486   : > { %1637 = vmax.xlane.f32.xlu1 %v1636_v9  ;;  %v1797_v10 = vpop.f32.mrb[14].mxu0 }
 0x487   : > { %v2350_v11 = vpop.f32.mrb[15].mxu0  ;;  %v1801_v12 = vsel %vm647_vm3, %v1797_v10, -inf }
 0x488   : > { %1802 = vmax.xlane.f32.xlu0 %v1801_v12 }
 0x501   : > { %v978_v13 = vpop.xlane.xlu0 %977 }
 0x502   : > { %v979_v14 = vsub.f32 %v972_v52, %v978_v13 }
 0x504   : > { %v980_v15 = vmul.f32 1.442695, %v979_v14 }
 0x505   : > { %v1143_v16 = vpop.xlane.xlu0 %1142 }
 0x506   : > { %2511 = vpow2.f32 %v980_v15  ;;  %v1144_v17 = vsub.f32 %v1137_v55, %v1143_v16 }
 0x508   : > { %v1145_v18 = vmul.f32 1.442695, %v1144_v17 }
 0x50a   : > { %2513 = vpow2.f32 %v1145_v18  ;;  %v350_v18 = vld [vmem:[#allocation10] sm:$0xff] }
 0x50b   : > { %v812_v19 = vpop.xlane.xlu1 %811 }
 0x50c   : > { %v813_v45 = vsub.f32 %v3203_v62, %v812_v19  ;;  %v351_v19 = vld [vmem:[#allocation10 + $0x8] sm:$0xff] }
 0x50d   : > { %v1473_v20 = vpop.xlane.xlu0 %1472 }
 0x50e   : > { %v1474_v21 = vsub.f32 %v1467_v3, %v1473_v20  ;;  %v814_v46 = vmul.f32 1.442695, %v813_v45 }
 0x50f   : > { %v1308_v22 = vpop.xlane.xlu1 %1307 }
 0x510   : > { %v3211_v23 = vpop.eup %2511  ;;  %v1475_v24 = vmul.f32 1.442695, %v1474_v21  ;;  %v1309_v25 = vsub.f32 %v1302_v60, %v1308_v22  ;;  %v2386_v21 = vpack.c.bf16 %v351_v19, %v350_v18 }
 0x511   : > { %v982_v26 = vsel %vm647_vm3, %v3211_v23, 0.0 }
 0x512   : > { %2515 = vpow2.f32 %v1475_v24  ;;  %v1310_v27 = vmul.f32 1.442695, %v1309_v25  ;;  %983 = vadd.xlane.f32.xlu0 %v982_v26  ;;  %2387 = vmatpush3.bf16.msra.mxu0 %v2386_v21 }
 0x513   : > { %v1638_v28 = vpop.xlane.xlu1 %1637  ;;  %2388 = vmatprep.subr.bf16.mxu0 %v2797_v0 }
 0x514   : > { %v3215_v29 = vpop.eup %2513  ;;  %2517 = vpow2.f32 %v1310_v27  ;;  %v1639_v30 = vsub.f32 %v1632_v7, %v1638_v28 }
 0x515   : > { %v1803_v31 = vpop.xlane.xlu0 %1802  ;;  %v1147_v32 = vsel %vm647_vm3, %v3215_v29, 0.0 }
 0x516   : > { %v1640_v34 = vmul.f32 1.442695, %v1639_v30  ;;  %v1804_v35 = vsub.f32 %v1797_v10, %v1803_v31  ;;  %1148 = vadd.xlane.f32.xlu1 %v1147_v32 }
 0x518   : > { %2519 = vpow2.f32 %v1640_v34  ;;  %v1805_v36 = vmul.f32 1.442695, %v1804_v35 }
 0x51a   : > { %2521 = vpow2.f32 %v1805_v36 }
 0x51b   : > { %2523 = vpow2.f32 %v814_v46 }
 0x51c   : > { %v3219_v37 = vpop.eup %2515 }
 0x51d   : > { %v1477_v38 = vsel %vm647_vm3, %v3219_v37, 0.0 }
 0x51e   : > { %v2518_v39 = vpop.eup %2517  ;;  %1478 = vadd.xlane.f32.xlu1 %v1477_v38 }
 0x51f   : > { %v1312_v40 = vsel %vm647_vm3, %v2518_v39, 0.0 }
 0x520   : > { %1313 = vadd.xlane.f32.xlu0 %v1312_v40 }
 0x522   : > { %v3224_v41 = vpop.eup %2519 }
 0x523   : > { %v1642_v42 = vsel %vm647_vm3, %v3224_v41, 0.0 }
 0x524   : > { %v3228_v43 = vpop.eup %2521  ;;  %1643 = vadd.xlane.f32.xlu0 %v1642_v42 }
 0x525   : > { %v1807_v44 = vsel %vm647_vm3, %v3228_v43, 0.0  ;;  %v2524_v47 = vpop.eup %2523 }
 0x526   : > { %1808 = vadd.xlane.f32.xlu1 %v1807_v44  ;;  %v816_v48 = vsel %vm647_vm3, %v2524_v47, 0.0 }
 0x537   : > { %987 = vrot.lane.b32.xlu1 %v3153_v33, %s2801_s16  ;;  %s2188_s16 = sshll.u32 %s2871_s27, 7 }
 0x53a   : > { %822 = vrot.lane.b32.xlu0 %v3153_v33, %s2800_s28  ;;  %s2813_s28 = smov 28  }
 0x53e   : > { %1317 = vrot.lane.b32.xlu0 %v3153_v33, %s2803_s19 }
 0x542   : > { %1647 = vrot.lane.b32.xlu0 %v3153_v33, %s2805_s17 }
 0x55b   : > { %817 = vadd.xlane.f32.xlu1 %v816_v48 }
 0x56c   : > { %1152 = vrot.lane.b32.xlu1 %v3153_v33, %s2802_s12  ;;  %s337_s12 = scalar_lea.vmem [#allocation13], %s2151_s9  ;;  %s2814_s9 = smov [#allocation13]  }
 0x56d   : > { %s2022_s19 = sshll.u32 %s337_s12, 4  ;;  %s3291_s19 = int_to_ptr.vmem [resolvable:$true] %s2022_s19 }
 0x56e   : > { %s2709_s27 = scalar_lea.vmem %s3291_s19, 128 }
 0x56f   : > { %p2710_p7 = scmp.ne.s32.totalorder %s3291_s19, %s2709_s27 }
 0x570   : > { %1482 = vrot.lane.b32.xlu1 %v3153_v33, %s2804_s20 }
 0x571   : > { %p2711_p12 = pnand %p2710_p7, %p3359_p4 }
 0x573   : > { %p2712_p1 = pneg %p2711_p12 }
 0x574   : > { %1812 = vrot.lane.b32.xlu1 %v3153_v33, %s2806_s10  ;;  %s3289_s10 = scalar_lea.hbm %s3340_s6, %s2188_s16 }
 0x59f   : > { %v984_v49 = vpop.xlane.xlu0 %983 }
 0x5a3   : > { %v1149_v53 = vpop.xlane.xlu1 %1148 }
 0x5ab   : > { %v1479_v54 = vpop.xlane.xlu1 %1478 }
 0x5ad   : > { %v1314_v50 = vpop.xlane.xlu0 %1313 }
 0x5b1   : > { %v1644_v51 = vpop.xlane.xlu0 %1643 }
 0x5b3   : > { %v1809_v55 = vpop.xlane.xlu1 %1808 }
 0x5b5   : > { %v823_v52 = vpop.permute.xlu0 %822 }
 0x5b6   : > { %2292 = vmatpush3.msra.mxu1 %v823_v52 }
 0x5b7   : > { %2301 = vmatprep.subr.mxu1 %v2799_v1  ;;  %v988_v56 = vpop.permute.xlu1 %987 }
 0x5b9   : > { %v1318_v4 = vpop.permute.xlu0 %1317 }
 0x5bd   : > { %v1648_v10 = vpop.permute.xlu0 %1647 }
 0x5e8   : > { %v818_v57 = vpop.xlane.xlu1 %817 }
 0x5e9   : > { %2525 = vrcp.f32 %v818_v57 }
 0x5ea   : > { %2527 = vrcp.f32 %v984_v49 }
 0x5eb   : > { %2529 = vrcp.f32 %v1149_v53 }
 0x5ec   : > { %2531 = vrcp.f32 %v1314_v50  ;;  %v1153_v63 = vpop.permute.xlu1 %1152 }
 0x5ed   : > { %2533 = vrcp.f32 %v1479_v54 }
 0x5ee   : > { %2535 = vrcp.f32 %v1644_v51 }
 0x5ef   : > { %2537 = vrcp.f32 %v1809_v55 }
 0x5f0   : > { %v1483_v7 = vpop.permute.xlu1 %1482 }
 0x5f3   : > { %v2526_v59 = vpop.eup %2525 }
 0x5f4   : > { %v820_v60 = vmul.f32 %v2526_v59, %v2524_v47  ;;  %v2528_v61 = vpop.eup %2527  ;;  %v1813_v13 = vpop.permute.xlu1 %1812 }
 0x5f5   : > { %v986_v33 = vmul.f32 %v2528_v61, %v3211_v23  ;;  %v2530_v62 = vpop.eup %2529  ;;  %v353_v23 = vld [vmem:[#allocation10 + $0x18] sm:$0xff] }
 0x5f6   : > { %2294 = vmatmul.mubr.msk.f32.vlgmr.msra.gmra.mrb[8].mxu1 %vm647_vm3, %v820_v60  ;;  %v1151_v2 = vmul.f32 %v2530_v62, %v3215_v29  ;;  %v2532_v3 = vpop.eup %2531 }
 0x5f7   : > { %2302 = vmatpush3.msra.mxu1 %v988_v56  ;;  %2303 = vmatprep.mubr.msk.f32.mxu1 %vm2798_vm0, %v2799_v1  ;;  %v1316_v5 = vmul.f32 %v2532_v3, %v2518_v39  ;;  %v2534_v6 = vpop.eup %2533 }
 0x5f8   : > { %2311 = vmatprep.subr.mxu1 %v2799_v1  ;;  %v1481_v8 = vmul.f32 %v2534_v6, %v3219_v37  ;;  %v2536_v9 = vpop.eup %2535 }
 0x5f9   : > { %v1646_v11 = vmul.f32 %v2536_v9, %v3224_v41  ;;  %v2538_v12 = vpop.eup %2537 }
 0x5fa   : > { %2304 = vmatmul.mubr.msk.f32.vlgmr.msra.gmra.mrb[10].mxu1 %vm647_vm3, %v986_v33  ;;  %v1811_v14 = vmul.f32 %v2538_v12, %v3228_v43 }
 0x5fb   : > { %2312 = vmatpush3.msra.mxu1 %v1153_v63  ;;  %2313 = vmatprep.mubr.msk.f32.mxu1 %vm2798_vm0, %v2799_v1 }
 0x5fc   : > { %2321 = vmatprep.subr.mxu1 %v2799_v1 }
 0x5fe   : > { %2314 = vmatmul.mubr.msk.f32.vlgmr.msra.gmra.mrb[12].mxu1 %vm647_vm3, %v1151_v2 }
 0x5ff   : > { %2322 = vmatpush3.msra.mxu1 %v1318_v4  ;;  %2323 = vmatprep.mubr.msk.f32.mxu1 %vm2798_vm0, %v2799_v1 }
 0x600   : > { %2331 = vmatprep.subr.mxu1 %v2799_v1 }
 0x602   : > { %2324 = vmatmul.mubr.msk.f32.vlgmr.msra.gmra.mrb[14].mxu1 %vm647_vm3, %v1316_v5 }
 0x603   : > { %2332 = vmatpush3.msra.mxu1 %v1483_v7  ;;  %2333 = vmatprep.mubr.msk.f32.mxu1 %vm2798_vm0, %v2799_v1 }
 0x604   : > { %2341 = vmatprep.subr.mxu1 %v2799_v1 }
 0x606   : > { %2334 = vmatmul.mubr.msk.f32.vlgmr.msra.gmra.mrb[16].mxu1 %vm647_vm3, %v1481_v8 }
 0x607   : > { %2342 = vmatpush3.msra.mxu1 %v1648_v10  ;;  %2343 = vmatprep.mubr.msk.f32.mxu1 %vm2798_vm0, %v2799_v1 }
 0x608   : > { %2351 = vmatprep.subr.mxu1 %v2799_v1 }
 0x60a   : > { %2344 = vmatmul.mubr.msk.f32.vlgmr.msra.gmra.mrb[18].mxu1 %vm647_vm3, %v1646_v11 }
 0x60b   : > { %2352 = vmatpush3.msra.mxu1 %v1813_v13  ;;  %2353 = vmatprep.mubr.msk.f32.mxu1 %vm2798_vm0, %v2799_v1  ;;  %v352_v1 = vld [vmem:[#allocation10 + $0x10] sm:$0xff] }
 0x60c   : > { %v2389_v25 = vpack.c.bf16 %v353_v23, %v352_v1 }
 0x60e   : > { %2354 = vmatmul.mubr.msk.f32.vlgmr.msra.gmra.mrb[20].mxu1 %vm647_vm3, %v1811_v14  ;;  %2390 = vmatpush3.bf16.msra.mxu0 %v2389_v25 }
 0x6c9   : > { %v894_v15 = vpop.f32.mrb[8].mxu1 }
 0x6ca   : > { %1889 = vrot.lane.b32.xlu0 %v894_v15, %s2807_s26  ;;  %v2295_v16 = vpop.f32.mrb[9].mxu1  ;;  %s2009_s26 = scalar_lea.sflag [#allocation4], %s3090_s15 }
 0x6cd   : > { %v1059_v17 = vpop.f32.mrb[10].mxu1 }
 0x6ce   : > { %1893 = vrot.lane.b32.xlu1 %v1059_v17, %s2808_s11  ;;  %v2305_v20 = vpop.f32.mrb[11].mxu1  ;;  %s2713_s11 = sshll.u32 %s2814_s9, 4  ;;  %s2714_s11 = int_to_ptr.vmem [resolvable:$false] %s2713_s11 }
 0x6cf   : > { %p2716_p13 = scmp.lt.s32.totalorder %s3291_s19, %s2714_s11 }
 0x6d1   : > { %v1224_v22 = vpop.f32.mrb[12].mxu1 }
 0x6d2   : > { %1897 = vrot.lane.b32.xlu0 %v1224_v22, %s2809_s13  ;;  %v2315_v24 = vpop.f32.mrb[13].mxu1  ;;  %s2715_s13 = scalar_lea.vmem %s2714_s11, 256 }
 0x6d3   : > { %p2717_p0 = scmp.lt.s32.totalorder %s2715_s13, %s2709_s27 }
 0x6d5   : > { %v1389_v26 = vpop.f32.mrb[14].mxu1  ;;  %p2718_p2 = por %p2717_p0, %p2716_p13 }
 0x6d6   : > { %1901 = vrot.lane.b32.xlu1 %v1389_v26, %s2810_s30  ;;  %v2325_v27 = vpop.f32.mrb[15].mxu1 }
 0x6d7   : > { %p2719_p3 = pnand %p2718_p2, %p2712_p1 }
 0x6d9   : > { %v1554_v28 = vpop.f32.mrb[16].mxu1 }
 0x6da   : > { %1905 = vrot.lane.b32.xlu0 %v1554_v28, %s2811_s29  ;;  %v2335_v29 = vpop.f32.mrb[17].mxu1 }
 0x6dd   : > { %v1719_v30 = vpop.f32.mrb[18].mxu1 }
 0x6de   : > { %1909 = vrot.lane.b32.xlu1 %v1719_v30, %s2812_s8  ;;  %v2345_v31 = vpop.f32.mrb[19].mxu1 }
 0x6e1   : > { %v1884_v0 = vpop.f32.mrb[20].mxu1 }
 0x6e2   : > { %1913 = vrot.lane.b32.xlu0 %v1884_v0, %s2813_s28  ;;  %v2355_v32 = vpop.f32.mrb[21].mxu1 }
 0x73c   : > { %v1890_v34 = vpop.permute.xlu0 %1889 }
 0x73d   : > { %v1916_v38 = vsel %vm570_vm2, %v3201_v58, %v1890_v34  ;;  %v2185_v58 = vld [vmem:[#allocation11] ss:$0 sm:$0xff] }
 0x740   : > { %v1894_v35 = vpop.permute.xlu1 %1893 }
 0x741   : > { %v1917_v39 = vsel %vm647_vm3, %v1916_v38, %v1894_v35 }
 0x744   : > { %v1898_v36 = vpop.permute.xlu0 %1897 }
 0x745   : > { %v1919_v41 = vsel %vm1918_vm4, %v1917_v39, %v1898_v36 }
 0x748   : > { %v1902_v37 = vpop.permute.xlu1 %1901 }
 0x749   : > { %v1921_v43 = vsel %vm1920_vm5, %v1919_v41, %v1902_v37 }
 0x74c   : > { %v1906_v40 = vpop.permute.xlu0 %1905 }
 0x74d   : > { %v1923_v44 = vsel %vm1922_vm6, %v1921_v43, %v1906_v40 }
 0x750   : > { %v1910_v42 = vpop.permute.xlu1 %1909 }
 0x751   : > { %v1925_v45 = vsel %vm1924_vm7, %v1923_v44, %v1910_v42 }
 0x754   : > { %v1914_v46 = vpop.permute.xlu0 %1913 }
 0x755   : > { %v1927_v47 = vsel %vm1926_vm8, %v1925_v45, %v1914_v46 }
 0x756   : > { %2365 = vmatmul.mubr.msk.f32.vlgmr.msra.gmra.mrb[16].mxu0 %vm356_vm1, %v1927_v47 }
 0x829   : > { %v2003_v48 = vpop.f32.mrb[16].mxu0 }
 0x82a   : > { %v2004_v49 = vadd.f32 %v2185_v58, %v2003_v48  ;;  %v2366_v50 = vpop.f32.mrb[17].mxu0 }
 0x82c   : > { %2007 = vst.msk [vmem:[%s337_s12] sm:$0xff] %vm356_vm1, %v2004_v49 }
 0x82d   : > { %2722 = shalt.err (!%p2719_p3)
}
 0x82e   : > { %s2723_s15 = scalar_lea.hbm %s3289_s10, 128  ;;  %s2727_s8 = scalar_lea.hbm %s3340_s6, 256 }
 0x82f   : > { %p2724_p6 = scmp.ne.s32.totalorder %s3289_s10, %s2723_s15  ;;  %p2728_p8 = scmp.lt.u32.totalorder %s3289_s10, %s3340_s6 }
 0x830   : > { %p2729_p5 = scmp.lt.u32.totalorder %s2727_s8, %s2723_s15  ;;  %p2731_p7 = scmp.lt.u32.totalorder %s2723_s15, %s3289_s10 }
 0x831   : > { %p2725_p10 = pnand %p2724_p6, %p3359_p4 }
 0x832   : > { %p2730_p9 = por %p2729_p5, %p2728_p8 }
 0x833   : > { %p2726_p11 = pneg %p2725_p10 }
 0x834   : > { %p2732_p12 = por %p2731_p7, %p2730_p9 }
 0x836   : > { %p2733_p1 = pnand %p2732_p12, %p2726_p11 }
 0x838   : > { %2736 = shalt.err (!%p2733_p1)
}
 0x839   : > { %2413 = dma.vmem_to_hbm [thread:$0]  (%p3359_p4), %s3291_s19, 128, %s3289_s10, %s2009_s26  }
 0x83a PF: > { %s2034_s12 = sand.u32 1, %s2775_s21   ;;  %p3360_p13 = scmp.ne.s32.totalorder %s3350_s18, 0 }
 0x83b   : > { %p3361_p0 = scmp.ge.s32.totalorder %s2787_s24, 2  ;;  %s2035_s20 = scalar_lea.sflag [#allocation4], %s2034_s12 }
 0x83d   : > { %p2436_p2 = pnand %p3361_p0, %p3360_p13 }
 0x83f   : > { %2770 = dma.done.wait (!%p2436_p2), %s2035_s20, 128  }
 0x840   : > { %2772 = vsyncadd (!%p2436_p2), %s2035_s20, 4294967168  ;;  %p22_p3 = scmp.ge.s32.totalorder %s3020_s7, 4   ;;  %s3362_s21 = smov %s2779_s22 }
 0x841   : > { %s3363_s22 = smov %s2783_s23  ;;  %s3364_s23 = smov %s3032_s14 }
 0x842   : > { %s3365_s24 = smov %s3020_s7  ;;  %24 = sbr.rel (!%p22_p3) target bundleno = 8 (0x8), region = 109 }
 0x849   :  { %2040 = vsyncpa [#allocation3], 1 }
 0x84a   :  { %2042 = vsyncpa [#allocation3 + $0x1], 1 }
 0x84b   :  { %2043 = vsyncpa [#allocation6], 1 }
 0x84c   :  { %2044 = vsyncpa [#allocation9], 1 }
 0x84d   :  { %2045 = vsyncpa [#allocation12], 1 }
 0x84e   :  { %2046 = vsyncpa [#allocation4], 1 }
 0x84f   :  { %2048 = vsyncpa [#allocation4 + $0x1], 1 }

</bundles_post_ra>
